<compile_context>
chip_gen: v5e
topology: v5e:2x2
jax: 0.10.0
libtpu: 0.0.40
codegen_flags: <defaults>
</compile_context>

<pallas_src>
import functools
import math

import jax
import jax.numpy as jnp
from jax.experimental import pallas as pl
from jax.experimental.pallas import tpu as pltpu


# ----------------------------------------------------------------------------
# Fused DecoderLayer kernel
# ----------------------------------------------------------------------------

def _decoder_layer_kernel(
    x_ref, enc_ref,
    # self-attention (packed heads)
    wq_s_ref, bq_s_ref, wk_s_ref, bk_s_ref, wv_s_ref, bv_s_ref,
    wo_s_ref, bo_s_ref, g_s_ref, be_s_ref,
    # cross-attention (packed heads)
    wq_c_ref, bq_c_ref, wk_c_ref, bk_c_ref, wv_c_ref, bv_c_ref,
    wo_c_ref, bo_c_ref, g_c_ref, be_c_ref,
    # position-wise FFN + final LayerNorm
    w1_ref, b1_ref, w2_ref, b2_ref, g_f_ref, be_f_ref,
    o_ref, *, n_heads, d_k, d_v):
  B, Lq, D = x_ref.shape
  Lkv = enc_ref.shape[1]

  def layer_norm(y, g, b):
    # nn.LayerNorm: eps=1e-5, biased variance, all in f32.
    mean = jnp.mean(y, axis=-1, keepdims=True)
    var = jnp.mean((y - mean) ** 2, axis=-1, keepdims=True)
    return (y - mean) * jax.lax.rsqrt(var + 1e-5) * g + b

  def mha(xq, xkv, lq, lkv, wq, bq, wk, bk, wv, bv, wo, bo, g, be, causal):
    # xq: (B*lq, D) f32 residual stream; xkv: (B*lkv, D) f32.
    # Batched head projections: one (B*L, D) x (D, H*d) bf16 matmul each.
    q = jnp.dot(xq.astype(jnp.bfloat16), wq,
                preferred_element_type=jnp.float32) + bq
    k = jnp.dot(xkv.astype(jnp.bfloat16), wk,
                preferred_element_type=jnp.float32) + bk
    v = jnp.dot(xkv.astype(jnp.bfloat16), wv,
                preferred_element_type=jnp.float32) + bv
    scale = 1.0 / math.sqrt(d_k)
    if causal:
      row = jax.lax.broadcasted_iota(jnp.int32, (lq, lkv), 0)
      col = jax.lax.broadcasted_iota(jnp.int32, (lq, lkv), 1)
      neg = jnp.where(col > row, -1e9, 0.0)  # f32 additive mask

    ctx_rows = []
    for bi in range(B):            # static unroll over tiny batch
      qb = q[bi * lq:(bi + 1) * lq]
      kb = k[bi * lkv:(bi + 1) * lkv]
      vb = v[bi * lkv:(bi + 1) * lkv]
      heads = []
      for h in range(n_heads):     # only (L, L) score/context math is per-head
        qh = qb[:, h * d_k:(h + 1) * d_k].astype(jnp.bfloat16)
        kh = kb[:, h * d_k:(h + 1) * d_k].astype(jnp.bfloat16)
        vh = vb[:, h * d_v:(h + 1) * d_v].astype(jnp.bfloat16)
        # scores = qh @ kh^T  (contract last dims; no explicit transpose)
        s = jax.lax.dot_general(qh, kh, (((1,), (1,)), ((), ())),
                                preferred_element_type=jnp.float32) * scale
        if causal:
          s = s + neg
        s = s - jnp.max(s, axis=-1, keepdims=True)
        p = jnp.exp(s)
        p = p * pl.reciprocal(jnp.sum(p, axis=-1, keepdims=True), approx=True)
        heads.append(jnp.dot(p.astype(jnp.bfloat16), vh,
                             preferred_element_type=jnp.float32))
      ctx_rows.append(jnp.concatenate(heads, axis=-1))        # (lq, H*d_v)
    ctx = jnp.concatenate(ctx_rows, axis=0)                   # (B*lq, H*d_v)
    out = jnp.dot(ctx.astype(jnp.bfloat16), wo,
                  preferred_element_type=jnp.float32) + bo
    # dropout (eval) == identity; residual + LayerNorm fused here.
    return layer_norm(xq + out, g, be)

  x2 = x_ref[...].reshape(B * Lq, D)
  enc2 = enc_ref[...].reshape(B * Lkv, D)

  # Self-attention (ProbAttention approximated by full causal MHA) + Add&Norm.
  y = mha(x2, x2, Lq, Lq,
          wq_s_ref[...], bq_s_ref[...], wk_s_ref[...], bk_s_ref[...],
          wv_s_ref[...], bv_s_ref[...], wo_s_ref[...], bo_s_ref[...],
          g_s_ref[...], be_s_ref[...], causal=True)
  # Cross-attention (FullAttention) + Add&Norm.
  y = mha(y, enc2, Lq, Lkv,
          wq_c_ref[...], bq_c_ref[...], wk_c_ref[...], bk_c_ref[...],
          wv_c_ref[...], bv_c_ref[...], wo_c_ref[...], bo_c_ref[...],
          g_c_ref[...], be_c_ref[...], causal=False)
  # Position-wise FFN (Conv1d k=1 == matmul) + residual + LayerNorm.
  h1 = jnp.dot(y.astype(jnp.bfloat16), w1_ref[...],
               preferred_element_type=jnp.float32) + b1_ref[...]
  h1 = jax.nn.gelu(h1, approximate=True)
  h2 = jnp.dot(h1.astype(jnp.bfloat16), w2_ref[...],
               preferred_element_type=jnp.float32) + b2_ref[...]
  z = layer_norm(y + h2, g_f_ref[...], be_f_ref[...])
  o_ref[...] = z.reshape(B, Lq, D)


# ----------------------------------------------------------------------------
# pallas_call wrapper
# ----------------------------------------------------------------------------

def decoder_layer_forward(params, x, enc_outputs, *, n_heads, d_k, d_v):
  B, Lq, D = x.shape
  ps, pc, pf = params["self_attn"], params["cross_attn"], params["ffn"]
  args = (
      x, enc_outputs,
      ps["w_q"], ps["b_q"], ps["w_k"], ps["b_k"], ps["w_v"], ps["b_v"],
      ps["w_o"], ps["b_o"], ps["ln_g"], ps["ln_b"],
      pc["w_q"], pc["b_q"], pc["w_k"], pc["b_k"], pc["w_v"], pc["b_v"],
      pc["w_o"], pc["b_o"], pc["ln_g"], pc["ln_b"],
      pf["w1"], pf["b1"], pf["w2"], pf["b2"], pf["ln_g"], pf["ln_b"],
  )
  # Single grid step; every operand is one full-array VMEM block.
  in_specs = [
      pl.BlockSpec(a.shape, lambda i, nd=a.ndim: (0,) * nd) for a in args
  ]
  kernel = functools.partial(_decoder_layer_kernel,
                             n_heads=n_heads, d_k=d_k, d_v=d_v)
  return pl.pallas_call(
      kernel,
      out_shape=jax.ShapeDtypeStruct((B, Lq, D), jnp.float32),
      grid=(1,),
      in_specs=in_specs,
      out_specs=pl.BlockSpec((B, Lq, D), lambda i: (0, 0, 0)),
      compiler_params=pltpu.CompilerParams(
          dimension_semantics=("arbitrary",)),
  )(*args)


# ----------------------------------------------------------------------------
# Parameter init (deterministic, synthetic); matmul weights stored in bf16
# ----------------------------------------------------------------------------

def _init_attention(key, d_model, n_heads, d_k, d_v):
  ks = jax.random.split(key, 8)
  s = 0.05

  def w(k, shape):
    return (jax.random.normal(k, shape, jnp.float32) * s).astype(jnp.bfloat16)

  return dict(
      w_q=w(ks[0], (d_model, n_heads * d_k)),
      b_q=jax.random.normal(ks[1], (1, n_heads * d_k), jnp.float32) * 0.01,
      w_k=w(ks[2], (d_model, n_heads * d_k)),
      b_k=jax.random.normal(ks[3], (1, n_heads * d_k), jnp.float32) * 0.01,
      w_v=w(ks[4], (d_model, n_heads * d_v)),
      b_v=jax.random.normal(ks[5], (1, n_heads * d_v), jnp.float32) * 0.01,
      w_o=w(ks[6], (n_heads * d_v, d_model)),
      b_o=jax.random.normal(ks[7], (1, d_model), jnp.float32) * 0.01,
      ln_g=jnp.ones((1, d_model), jnp.float32),
      ln_b=jnp.zeros((1, d_model), jnp.float32),
  )


def _init_ffn(key, d_model, d_ff):
  ks = jax.random.split(key, 4)
  s = 0.05
  return dict(
      w1=(jax.random.normal(ks[0], (d_model, d_ff), jnp.float32) * s
          ).astype(jnp.bfloat16),
      b1=jax.random.normal(ks[1], (1, d_ff), jnp.float32) * 0.01,
      w2=(jax.random.normal(ks[2], (d_ff, d_model), jnp.float32) * s
          ).astype(jnp.bfloat16),
      b2=jax.random.normal(ks[3], (1, d_model), jnp.float32) * 0.01,
      ln_g=jnp.ones((1, d_model), jnp.float32),
      ln_b=jnp.zeros((1, d_model), jnp.float32),
  )


def init_decoder_layer_params(key, d_model, d_ff, n_heads, d_k, d_v):
  k1, k2, k3 = jax.random.split(key, 3)
  return dict(
      self_attn=_init_attention(k1, d_model, n_heads, d_k, d_v),
      cross_attn=_init_attention(k2, d_model, n_heads, d_k, d_v),
      ffn=_init_ffn(k3, d_model, d_ff),
  )


# ----------------------------------------------------------------------------
# Main
# ----------------------------------------------------------------------------

if __name__ == "__main__":
  B, L_dec, L_enc = 2, 8, 16
  d_model, d_ff = 32, 64
  n_heads, d_k, d_v = 4, 8, 8

  key = jax.random.PRNGKey(0)
  kx, ke, kp = jax.random.split(key, 3)

  x = jax.random.normal(kx, (B, L_dec, d_model), jnp.float32)
  enc_outputs = jax.random.normal(ke, (B, L_enc, d_model), jnp.float32)
  params = init_decoder_layer_params(kp, d_model, d_ff, n_heads, d_k, d_v)

  out = decoder_layer_forward(params, x, enc_outputs,
                              n_heads=n_heads, d_k=d_k, d_v=d_v)
  out = jax.block_until_ready(out)
  assert out.shape == (B, L_dec, d_model)
  assert bool(jnp.all(jnp.isfinite(out)))
  print("KERNEL_OK")
</pallas_src>

<mosaic_0001>
module attributes {stable_mosaic.version = 11 : i64} {
  func.func @_decoder_layer_kernel(%arg0: i32, %arg1: memref<2x8x32xf32, #tpu.memory_space<vmem>>, %arg2: memref<2x16x32xf32, #tpu.memory_space<vmem>>, %arg3: memref<32x32xbf16, #tpu.memory_space<vmem>>, %arg4: memref<1x32xf32, #tpu.memory_space<vmem>>, %arg5: memref<32x32xbf16, #tpu.memory_space<vmem>>, %arg6: memref<1x32xf32, #tpu.memory_space<vmem>>, %arg7: memref<32x32xbf16, #tpu.memory_space<vmem>>, %arg8: memref<1x32xf32, #tpu.memory_space<vmem>>, %arg9: memref<32x32xbf16, #tpu.memory_space<vmem>>, %arg10: memref<1x32xf32, #tpu.memory_space<vmem>>, %arg11: memref<1x32xf32, #tpu.memory_space<vmem>>, %arg12: memref<1x32xf32, #tpu.memory_space<vmem>>, %arg13: memref<32x32xbf16, #tpu.memory_space<vmem>>, %arg14: memref<1x32xf32, #tpu.memory_space<vmem>>, %arg15: memref<32x32xbf16, #tpu.memory_space<vmem>>, %arg16: memref<1x32xf32, #tpu.memory_space<vmem>>, %arg17: memref<32x32xbf16, #tpu.memory_space<vmem>>, %arg18: memref<1x32xf32, #tpu.memory_space<vmem>>, %arg19: memref<32x32xbf16, #tpu.memory_space<vmem>>, %arg20: memref<1x32xf32, #tpu.memory_space<vmem>>, %arg21: memref<1x32xf32, #tpu.memory_space<vmem>>, %arg22: memref<1x32xf32, #tpu.memory_space<vmem>>, %arg23: memref<32x64xbf16, #tpu.memory_space<vmem>>, %arg24: memref<1x64xf32, #tpu.memory_space<vmem>>, %arg25: memref<64x32xbf16, #tpu.memory_space<vmem>>, %arg26: memref<1x32xf32, #tpu.memory_space<vmem>>, %arg27: memref<1x32xf32, #tpu.memory_space<vmem>>, %arg28: memref<1x32xf32, #tpu.memory_space<vmem>>, %arg29: memref<2x8x32xf32, #tpu.memory_space<vmem>>) attributes {dimension_semantics = [#tpu.dimension_semantics<arbitrary>], iteration_bounds = array<i64: 1>, scalar_prefetch = 0 : i64, scratch_operands = 0 : i64, tpu.core_type = #tpu.core_type<tc>, window_params = [{pipeline_mode = #tpu.pipeline_mode<synchronous>, transform_indices = @transform_0, window_bounds = array<i64: 2, 8, 32>}, {pipeline_mode = #tpu.pipeline_mode<synchronous>, transform_indices = @transform_1, window_bounds = array<i64: 2, 16, 32>}, {pipeline_mode = #tpu.pipeline_mode<synchronous>, transform_indices = @transform_2, window_bounds = array<i64: 32, 32>}, {pipeline_mode = #tpu.pipeline_mode<synchronous>, transform_indices = @transform_3, window_bounds = array<i64: 1, 32>}, {pipeline_mode = #tpu.pipeline_mode<synchronous>, transform_indices = @transform_4, window_bounds = array<i64: 32, 32>}, {pipeline_mode = #tpu.pipeline_mode<synchronous>, transform_indices = @transform_5, window_bounds = array<i64: 1, 32>}, {pipeline_mode = #tpu.pipeline_mode<synchronous>, transform_indices = @transform_6, window_bounds = array<i64: 32, 32>}, {pipeline_mode = #tpu.pipeline_mode<synchronous>, transform_indices = @transform_7, window_bounds = array<i64: 1, 32>}, {pipeline_mode = #tpu.pipeline_mode<synchronous>, transform_indices = @transform_8, window_bounds = array<i64: 32, 32>}, {pipeline_mode = #tpu.pipeline_mode<synchronous>, transform_indices = @transform_9, window_bounds = array<i64: 1, 32>}, {pipeline_mode = #tpu.pipeline_mode<synchronous>, transform_indices = @transform_10, window_bounds = array<i64: 1, 32>}, {pipeline_mode = #tpu.pipeline_mode<synchronous>, transform_indices = @transform_11, window_bounds = array<i64: 1, 32>}, {pipeline_mode = #tpu.pipeline_mode<synchronous>, transform_indices = @transform_12, window_bounds = array<i64: 32, 32>}, {pipeline_mode = #tpu.pipeline_mode<synchronous>, transform_indices = @transform_13, window_bounds = array<i64: 1, 32>}, {pipeline_mode = #tpu.pipeline_mode<synchronous>, transform_indices = @transform_14, window_bounds = array<i64: 32, 32>}, {pipeline_mode = #tpu.pipeline_mode<synchronous>, transform_indices = @transform_15, window_bounds = array<i64: 1, 32>}, {pipeline_mode = #tpu.pipeline_mode<synchronous>, transform_indices = @transform_16, window_bounds = array<i64: 32, 32>}, {pipeline_mode = #tpu.pipeline_mode<synchronous>, transform_indices = @transform_17, window_bounds = array<i64: 1, 32>}, {pipeline_mode = #tpu.pipeline_mode<synchronous>, transform_indices = @transform_18, window_bounds = array<i64: 32, 32>}, {pipeline_mode = #tpu.pipeline_mode<synchronous>, transform_indices = @transform_19, window_bounds = array<i64: 1, 32>}, {pipeline_mode = #tpu.pipeline_mode<synchronous>, transform_indices = @transform_20, window_bounds = array<i64: 1, 32>}, {pipeline_mode = #tpu.pipeline_mode<synchronous>, transform_indices = @transform_21, window_bounds = array<i64: 1, 32>}, {pipeline_mode = #tpu.pipeline_mode<synchronous>, transform_indices = @transform_22, window_bounds = array<i64: 32, 64>}, {pipeline_mode = #tpu.pipeline_mode<synchronous>, transform_indices = @transform_23, window_bounds = array<i64: 1, 64>}, {pipeline_mode = #tpu.pipeline_mode<synchronous>, transform_indices = @transform_24, window_bounds = array<i64: 64, 32>}, {pipeline_mode = #tpu.pipeline_mode<synchronous>, transform_indices = @transform_25, window_bounds = array<i64: 1, 32>}, {pipeline_mode = #tpu.pipeline_mode<synchronous>, transform_indices = @transform_26, window_bounds = array<i64: 1, 32>}, {pipeline_mode = #tpu.pipeline_mode<synchronous>, transform_indices = @transform_27, window_bounds = array<i64: 1, 32>}, {pipeline_mode = #tpu.pipeline_mode<synchronous>, transform_indices = @transform_28, window_bounds = array<i64: 2, 8, 32>}]} {
    %c0 = arith.constant 0 : index
    %c0_0 = arith.constant 0 : index
    %c0_1 = arith.constant 0 : index
    %0 = vector.load %arg1[%c0, %c0_0, %c0_1] : memref<2x8x32xf32, #tpu.memory_space<vmem>>, vector<2x8x32xf32>
    %1 = vector.shape_cast %0 : vector<2x8x32xf32> to vector<16x32xf32>
    %c0_2 = arith.constant 0 : index
    %c0_3 = arith.constant 0 : index
    %c0_4 = arith.constant 0 : index
    %2 = vector.load %arg2[%c0_2, %c0_3, %c0_4] : memref<2x16x32xf32, #tpu.memory_space<vmem>>, vector<2x16x32xf32>
    %3 = vector.shape_cast %2 : vector<2x16x32xf32> to vector<32x32xf32>
    %c0_5 = arith.constant 0 : index
    %c0_6 = arith.constant 0 : index
    %4 = vector.load %arg3[%c0_5, %c0_6] : memref<32x32xbf16, #tpu.memory_space<vmem>>, vector<32x32xbf16>
    %c0_7 = arith.constant 0 : index
    %c0_8 = arith.constant 0 : index
    %5 = vector.load %arg4[%c0_7, %c0_8] : memref<1x32xf32, #tpu.memory_space<vmem>>, vector<1x32xf32>
    %c0_9 = arith.constant 0 : index
    %c0_10 = arith.constant 0 : index
    %6 = vector.load %arg5[%c0_9, %c0_10] : memref<32x32xbf16, #tpu.memory_space<vmem>>, vector<32x32xbf16>
    %c0_11 = arith.constant 0 : index
    %c0_12 = arith.constant 0 : index
    %7 = vector.load %arg6[%c0_11, %c0_12] : memref<1x32xf32, #tpu.memory_space<vmem>>, vector<1x32xf32>
    %c0_13 = arith.constant 0 : index
    %c0_14 = arith.constant 0 : index
    %8 = vector.load %arg7[%c0_13, %c0_14] : memref<32x32xbf16, #tpu.memory_space<vmem>>, vector<32x32xbf16>
    %c0_15 = arith.constant 0 : index
    %c0_16 = arith.constant 0 : index
    %9 = vector.load %arg8[%c0_15, %c0_16] : memref<1x32xf32, #tpu.memory_space<vmem>>, vector<1x32xf32>
    %c0_17 = arith.constant 0 : index
    %c0_18 = arith.constant 0 : index
    %10 = vector.load %arg9[%c0_17, %c0_18] : memref<32x32xbf16, #tpu.memory_space<vmem>>, vector<32x32xbf16>
    %c0_19 = arith.constant 0 : index
    %c0_20 = arith.constant 0 : index
    %11 = vector.load %arg10[%c0_19, %c0_20] : memref<1x32xf32, #tpu.memory_space<vmem>>, vector<1x32xf32>
    %c0_21 = arith.constant 0 : index
    %c0_22 = arith.constant 0 : index
    %12 = vector.load %arg11[%c0_21, %c0_22] : memref<1x32xf32, #tpu.memory_space<vmem>>, vector<1x32xf32>
    %c0_23 = arith.constant 0 : index
    %c0_24 = arith.constant 0 : index
    %13 = vector.load %arg12[%c0_23, %c0_24] : memref<1x32xf32, #tpu.memory_space<vmem>>, vector<1x32xf32>
    %14 = arith.truncf %1 : vector<16x32xf32> to vector<16x32xbf16>
    %cst = arith.constant dense<0.000000e+00> : vector<16x32xf32>
    %15 = tpu.matmul %14, %4, %cst {dimension_numbers = #tpu.dot_dimension_numbers<[1], [0], [0], [1], [0, 0, 1, 1], [], []>} : vector<16x32xbf16>, vector<32x32xbf16>, vector<16x32xf32> -> vector<16x32xf32>
    %16 = vector.broadcast %5 : vector<1x32xf32> to vector<16x32xf32>
    %17 = arith.addf %15, %16 : vector<16x32xf32>
    %18 = arith.truncf %1 : vector<16x32xf32> to vector<16x32xbf16>
    %cst_25 = arith.constant dense<0.000000e+00> : vector<16x32xf32>
    %19 = tpu.matmul %18, %6, %cst_25 {dimension_numbers = #tpu.dot_dimension_numbers<[1], [0], [0], [1], [0, 0, 1, 1], [], []>} : vector<16x32xbf16>, vector<32x32xbf16>, vector<16x32xf32> -> vector<16x32xf32>
    %20 = vector.broadcast %7 : vector<1x32xf32> to vector<16x32xf32>
    %21 = arith.addf %19, %20 : vector<16x32xf32>
    %22 = arith.truncf %1 : vector<16x32xf32> to vector<16x32xbf16>
    %cst_26 = arith.constant dense<0.000000e+00> : vector<16x32xf32>
    %23 = tpu.matmul %22, %8, %cst_26 {dimension_numbers = #tpu.dot_dimension_numbers<[1], [0], [0], [1], [0, 0, 1, 1], [], []>} : vector<16x32xbf16>, vector<32x32xbf16>, vector<16x32xf32> -> vector<16x32xf32>
    %24 = vector.broadcast %9 : vector<1x32xf32> to vector<16x32xf32>
    %25 = arith.addf %23, %24 : vector<16x32xf32>
    %26 = tpu.iota {dimensions = array<i32: 0>} : vector<8x8xi32>
    %27 = tpu.iota {dimensions = array<i32: 1>} : vector<8x8xi32>
    %28 = arith.cmpi sgt, %27, %26 : vector<8x8xi32>
    %cst_27 = arith.constant -1.000000e+09 : f32
    %cst_28 = arith.constant 0.000000e+00 : f32
    %29 = vector.broadcast %cst_27 : f32 to vector<8x8xf32>
    %30 = vector.broadcast %cst_28 : f32 to vector<8x8xf32>
    %31 = arith.select %28, %29, %30 : vector<8x8xi1>, vector<8x8xf32>
    %32 = vector.extract_strided_slice %17 {offsets = [0, 0], sizes = [8, 32], strides = [1, 1]} : vector<16x32xf32> to vector<8x32xf32>
    %33 = vector.extract_strided_slice %21 {offsets = [0, 0], sizes = [8, 32], strides = [1, 1]} : vector<16x32xf32> to vector<8x32xf32>
    %34 = vector.extract_strided_slice %25 {offsets = [0, 0], sizes = [8, 32], strides = [1, 1]} : vector<16x32xf32> to vector<8x32xf32>
    %35 = vector.extract_strided_slice %32 {offsets = [0, 0], sizes = [8, 8], strides = [1, 1]} : vector<8x32xf32> to vector<8x8xf32>
    %36 = arith.truncf %35 : vector<8x8xf32> to vector<8x8xbf16>
    %37 = vector.extract_strided_slice %33 {offsets = [0, 0], sizes = [8, 8], strides = [1, 1]} : vector<8x32xf32> to vector<8x8xf32>
    %38 = arith.truncf %37 : vector<8x8xf32> to vector<8x8xbf16>
    %39 = vector.extract_strided_slice %34 {offsets = [0, 0], sizes = [8, 8], strides = [1, 1]} : vector<8x32xf32> to vector<8x8xf32>
    %40 = arith.truncf %39 : vector<8x8xf32> to vector<8x8xbf16>
    %cst_29 = arith.constant dense<0.000000e+00> : vector<8x8xf32>
    %41 = tpu.matmul %36, %38, %cst_29 {dimension_numbers = #tpu.dot_dimension_numbers<[1], [1], [0], [0], [0, 0, 1, 0], [], []>} : vector<8x8xbf16>, vector<8x8xbf16>, vector<8x8xf32> -> vector<8x8xf32>
    %cst_30 = arith.constant 0.353553385 : f32
    %42 = vector.broadcast %cst_30 : f32 to vector<8x8xf32>
    %43 = arith.mulf %41, %42 : vector<8x8xf32>
    %44 = arith.addf %43, %31 : vector<8x8xf32>
    %cst_31 = arith.constant dense<0xFF800000> : vector<8xf32>
    %45 = vector.multi_reduction <maximumf>, %44, %cst_31 [1] : vector<8x8xf32> to vector<8xf32>
    %46 = vector.shape_cast %45 : vector<8xf32> to vector<8x1xf32>
    %47 = vector.broadcast %46 : vector<8x1xf32> to vector<8x8xf32>
    %48 = arith.subf %44, %47 : vector<8x8xf32>
    %49 = math.exp %48 : vector<8x8xf32>
    %cst_32 = arith.constant dense<0.000000e+00> : vector<8xf32>
    %50 = vector.multi_reduction <add>, %49, %cst_32 [1] : vector<8x8xf32> to vector<8xf32>
    %51 = vector.shape_cast %50 : vector<8xf32> to vector<8x1xf32>
    %52 = tpu.reciprocal %51 {approx = true} : vector<8x1xf32> -> vector<8x1xf32>
    %53 = vector.broadcast %52 : vector<8x1xf32> to vector<8x8xf32>
    %54 = arith.mulf %49, %53 : vector<8x8xf32>
    %55 = arith.truncf %54 : vector<8x8xf32> to vector<8x8xbf16>
    %cst_33 = arith.constant dense<0.000000e+00> : vector<8x8xf32>
    %56 = tpu.matmul %55, %40, %cst_33 {dimension_numbers = #tpu.dot_dimension_numbers<[1], [0], [0], [1], [0, 0, 1, 1], [], []>} : vector<8x8xbf16>, vector<8x8xbf16>, vector<8x8xf32> -> vector<8x8xf32>
    %57 = vector.extract_strided_slice %32 {offsets = [0, 8], sizes = [8, 8], strides = [1, 1]} : vector<8x32xf32> to vector<8x8xf32>
    %58 = arith.truncf %57 : vector<8x8xf32> to vector<8x8xbf16>
    %59 = vector.extract_strided_slice %33 {offsets = [0, 8], sizes = [8, 8], strides = [1, 1]} : vector<8x32xf32> to vector<8x8xf32>
    %60 = arith.truncf %59 : vector<8x8xf32> to vector<8x8xbf16>
    %61 = vector.extract_strided_slice %34 {offsets = [0, 8], sizes = [8, 8], strides = [1, 1]} : vector<8x32xf32> to vector<8x8xf32>
    %62 = arith.truncf %61 : vector<8x8xf32> to vector<8x8xbf16>
    %cst_34 = arith.constant dense<0.000000e+00> : vector<8x8xf32>
    %63 = tpu.matmul %58, %60, %cst_34 {dimension_numbers = #tpu.dot_dimension_numbers<[1], [1], [0], [0], [0, 0, 1, 0], [], []>} : vector<8x8xbf16>, vector<8x8xbf16>, vector<8x8xf32> -> vector<8x8xf32>
    %cst_35 = arith.constant 0.353553385 : f32
    %64 = vector.broadcast %cst_35 : f32 to vector<8x8xf32>
    %65 = arith.mulf %63, %64 : vector<8x8xf32>
    %66 = arith.addf %65, %31 : vector<8x8xf32>
    %cst_36 = arith.constant dense<0xFF800000> : vector<8xf32>
    %67 = vector.multi_reduction <maximumf>, %66, %cst_36 [1] : vector<8x8xf32> to vector<8xf32>
    %68 = vector.shape_cast %67 : vector<8xf32> to vector<8x1xf32>
    %69 = vector.broadcast %68 : vector<8x1xf32> to vector<8x8xf32>
    %70 = arith.subf %66, %69 : vector<8x8xf32>
    %71 = math.exp %70 : vector<8x8xf32>
    %cst_37 = arith.constant dense<0.000000e+00> : vector<8xf32>
    %72 = vector.multi_reduction <add>, %71, %cst_37 [1] : vector<8x8xf32> to vector<8xf32>
    %73 = vector.shape_cast %72 : vector<8xf32> to vector<8x1xf32>
    %74 = tpu.reciprocal %73 {approx = true} : vector<8x1xf32> -> vector<8x1xf32>
    %75 = vector.broadcast %74 : vector<8x1xf32> to vector<8x8xf32>
    %76 = arith.mulf %71, %75 : vector<8x8xf32>
    %77 = arith.truncf %76 : vector<8x8xf32> to vector<8x8xbf16>
    %cst_38 = arith.constant dense<0.000000e+00> : vector<8x8xf32>
    %78 = tpu.matmul %77, %62, %cst_38 {dimension_numbers = #tpu.dot_dimension_numbers<[1], [0], [0], [1], [0, 0, 1, 1], [], []>} : vector<8x8xbf16>, vector<8x8xbf16>, vector<8x8xf32> -> vector<8x8xf32>
    %79 = vector.extract_strided_slice %32 {offsets = [0, 16], sizes = [8, 8], strides = [1, 1]} : vector<8x32xf32> to vector<8x8xf32>
    %80 = arith.truncf %79 : vector<8x8xf32> to vector<8x8xbf16>
    %81 = vector.extract_strided_slice %33 {offsets = [0, 16], sizes = [8, 8], strides = [1, 1]} : vector<8x32xf32> to vector<8x8xf32>
    %82 = arith.truncf %81 : vector<8x8xf32> to vector<8x8xbf16>
    %83 = vector.extract_strided_slice %34 {offsets = [0, 16], sizes = [8, 8], strides = [1, 1]} : vector<8x32xf32> to vector<8x8xf32>
    %84 = arith.truncf %83 : vector<8x8xf32> to vector<8x8xbf16>
    %cst_39 = arith.constant dense<0.000000e+00> : vector<8x8xf32>
    %85 = tpu.matmul %80, %82, %cst_39 {dimension_numbers = #tpu.dot_dimension_numbers<[1], [1], [0], [0], [0, 0, 1, 0], [], []>} : vector<8x8xbf16>, vector<8x8xbf16>, vector<8x8xf32> -> vector<8x8xf32>
    %cst_40 = arith.constant 0.353553385 : f32
    %86 = vector.broadcast %cst_40 : f32 to vector<8x8xf32>
    %87 = arith.mulf %85, %86 : vector<8x8xf32>
    %88 = arith.addf %87, %31 : vector<8x8xf32>
    %cst_41 = arith.constant dense<0xFF800000> : vector<8xf32>
    %89 = vector.multi_reduction <maximumf>, %88, %cst_41 [1] : vector<8x8xf32> to vector<8xf32>
    %90 = vector.shape_cast %89 : vector<8xf32> to vector<8x1xf32>
    %91 = vector.broadcast %90 : vector<8x1xf32> to vector<8x8xf32>
    %92 = arith.subf %88, %91 : vector<8x8xf32>
    %93 = math.exp %92 : vector<8x8xf32>
    %cst_42 = arith.constant dense<0.000000e+00> : vector<8xf32>
    %94 = vector.multi_reduction <add>, %93, %cst_42 [1] : vector<8x8xf32> to vector<8xf32>
    %95 = vector.shape_cast %94 : vector<8xf32> to vector<8x1xf32>
    %96 = tpu.reciprocal %95 {approx = true} : vector<8x1xf32> -> vector<8x1xf32>
    %97 = vector.broadcast %96 : vector<8x1xf32> to vector<8x8xf32>
    %98 = arith.mulf %93, %97 : vector<8x8xf32>
    %99 = arith.truncf %98 : vector<8x8xf32> to vector<8x8xbf16>
    %cst_43 = arith.constant dense<0.000000e+00> : vector<8x8xf32>
    %100 = tpu.matmul %99, %84, %cst_43 {dimension_numbers = #tpu.dot_dimension_numbers<[1], [0], [0], [1], [0, 0, 1, 1], [], []>} : vector<8x8xbf16>, vector<8x8xbf16>, vector<8x8xf32> -> vector<8x8xf32>
    %101 = vector.extract_strided_slice %32 {offsets = [0, 24], sizes = [8, 8], strides = [1, 1]} : vector<8x32xf32> to vector<8x8xf32>
    %102 = arith.truncf %101 : vector<8x8xf32> to vector<8x8xbf16>
    %103 = vector.extract_strided_slice %33 {offsets = [0, 24], sizes = [8, 8], strides = [1, 1]} : vector<8x32xf32> to vector<8x8xf32>
    %104 = arith.truncf %103 : vector<8x8xf32> to vector<8x8xbf16>
    %105 = vector.extract_strided_slice %34 {offsets = [0, 24], sizes = [8, 8], strides = [1, 1]} : vector<8x32xf32> to vector<8x8xf32>
    %106 = arith.truncf %105 : vector<8x8xf32> to vector<8x8xbf16>
    %cst_44 = arith.constant dense<0.000000e+00> : vector<8x8xf32>
    %107 = tpu.matmul %102, %104, %cst_44 {dimension_numbers = #tpu.dot_dimension_numbers<[1], [1], [0], [0], [0, 0, 1, 0], [], []>} : vector<8x8xbf16>, vector<8x8xbf16>, vector<8x8xf32> -> vector<8x8xf32>
    %cst_45 = arith.constant 0.353553385 : f32
    %108 = vector.broadcast %cst_45 : f32 to vector<8x8xf32>
    %109 = arith.mulf %107, %108 : vector<8x8xf32>
    %110 = arith.addf %109, %31 : vector<8x8xf32>
    %cst_46 = arith.constant dense<0xFF800000> : vector<8xf32>
    %111 = vector.multi_reduction <maximumf>, %110, %cst_46 [1] : vector<8x8xf32> to vector<8xf32>
    %112 = vector.shape_cast %111 : vector<8xf32> to vector<8x1xf32>
    %113 = vector.broadcast %112 : vector<8x1xf32> to vector<8x8xf32>
    %114 = arith.subf %110, %113 : vector<8x8xf32>
    %115 = math.exp %114 : vector<8x8xf32>
    %cst_47 = arith.constant dense<0.000000e+00> : vector<8xf32>
    %116 = vector.multi_reduction <add>, %115, %cst_47 [1] : vector<8x8xf32> to vector<8xf32>
    %117 = vector.shape_cast %116 : vector<8xf32> to vector<8x1xf32>
    %118 = tpu.reciprocal %117 {approx = true} : vector<8x1xf32> -> vector<8x1xf32>
    %119 = vector.broadcast %118 : vector<8x1xf32> to vector<8x8xf32>
    %120 = arith.mulf %115, %119 : vector<8x8xf32>
    %121 = arith.truncf %120 : vector<8x8xf32> to vector<8x8xbf16>
    %cst_48 = arith.constant dense<0.000000e+00> : vector<8x8xf32>
    %122 = tpu.matmul %121, %106, %cst_48 {dimension_numbers = #tpu.dot_dimension_numbers<[1], [0], [0], [1], [0, 0, 1, 1], [], []>} : vector<8x8xbf16>, vector<8x8xbf16>, vector<8x8xf32> -> vector<8x8xf32>
    %123 = tpu.concatenate %56, %78, %100, %122 in 1 : vector<8x8xf32>, vector<8x8xf32>, vector<8x8xf32>, vector<8x8xf32> -> vector<8x32xf32>
    %124 = vector.extract_strided_slice %17 {offsets = [8, 0], sizes = [8, 32], strides = [1, 1]} : vector<16x32xf32> to vector<8x32xf32>
    %125 = vector.extract_strided_slice %21 {offsets = [8, 0], sizes = [8, 32], strides = [1, 1]} : vector<16x32xf32> to vector<8x32xf32>
    %126 = vector.extract_strided_slice %25 {offsets = [8, 0], sizes = [8, 32], strides = [1, 1]} : vector<16x32xf32> to vector<8x32xf32>
    %127 = vector.extract_strided_slice %124 {offsets = [0, 0], sizes = [8, 8], strides = [1, 1]} : vector<8x32xf32> to vector<8x8xf32>
    %128 = arith.truncf %127 : vector<8x8xf32> to vector<8x8xbf16>
    %129 = vector.extract_strided_slice %125 {offsets = [0, 0], sizes = [8, 8], strides = [1, 1]} : vector<8x32xf32> to vector<8x8xf32>
    %130 = arith.truncf %129 : vector<8x8xf32> to vector<8x8xbf16>
    %131 = vector.extract_strided_slice %126 {offsets = [0, 0], sizes = [8, 8], strides = [1, 1]} : vector<8x32xf32> to vector<8x8xf32>
    %132 = arith.truncf %131 : vector<8x8xf32> to vector<8x8xbf16>
    %cst_49 = arith.constant dense<0.000000e+00> : vector<8x8xf32>
    %133 = tpu.matmul %128, %130, %cst_49 {dimension_numbers = #tpu.dot_dimension_numbers<[1], [1], [0], [0], [0, 0, 1, 0], [], []>} : vector<8x8xbf16>, vector<8x8xbf16>, vector<8x8xf32> -> vector<8x8xf32>
    %cst_50 = arith.constant 0.353553385 : f32
    %134 = vector.broadcast %cst_50 : f32 to vector<8x8xf32>
    %135 = arith.mulf %133, %134 : vector<8x8xf32>
    %136 = arith.addf %135, %31 : vector<8x8xf32>
    %cst_51 = arith.constant dense<0xFF800000> : vector<8xf32>
    %137 = vector.multi_reduction <maximumf>, %136, %cst_51 [1] : vector<8x8xf32> to vector<8xf32>
    %138 = vector.shape_cast %137 : vector<8xf32> to vector<8x1xf32>
    %139 = vector.broadcast %138 : vector<8x1xf32> to vector<8x8xf32>
    %140 = arith.subf %136, %139 : vector<8x8xf32>
    %141 = math.exp %140 : vector<8x8xf32>
    %cst_52 = arith.constant dense<0.000000e+00> : vector<8xf32>
    %142 = vector.multi_reduction <add>, %141, %cst_52 [1] : vector<8x8xf32> to vector<8xf32>
    %143 = vector.shape_cast %142 : vector<8xf32> to vector<8x1xf32>
    %144 = tpu.reciprocal %143 {approx = true} : vector<8x1xf32> -> vector<8x1xf32>
    %145 = vector.broadcast %144 : vector<8x1xf32> to vector<8x8xf32>
    %146 = arith.mulf %141, %145 : vector<8x8xf32>
    %147 = arith.truncf %146 : vector<8x8xf32> to vector<8x8xbf16>
    %cst_53 = arith.constant dense<0.000000e+00> : vector<8x8xf32>
    %148 = tpu.matmul %147, %132, %cst_53 {dimension_numbers = #tpu.dot_dimension_numbers<[1], [0], [0], [1], [0, 0, 1, 1], [], []>} : vector<8x8xbf16>, vector<8x8xbf16>, vector<8x8xf32> -> vector<8x8xf32>
    %149 = vector.extract_strided_slice %124 {offsets = [0, 8], sizes = [8, 8], strides = [1, 1]} : vector<8x32xf32> to vector<8x8xf32>
    %150 = arith.truncf %149 : vector<8x8xf32> to vector<8x8xbf16>
    %151 = vector.extract_strided_slice %125 {offsets = [0, 8], sizes = [8, 8], strides = [1, 1]} : vector<8x32xf32> to vector<8x8xf32>
    %152 = arith.truncf %151 : vector<8x8xf32> to vector<8x8xbf16>
    %153 = vector.extract_strided_slice %126 {offsets = [0, 8], sizes = [8, 8], strides = [1, 1]} : vector<8x32xf32> to vector<8x8xf32>
    %154 = arith.truncf %153 : vector<8x8xf32> to vector<8x8xbf16>
    %cst_54 = arith.constant dense<0.000000e+00> : vector<8x8xf32>
    %155 = tpu.matmul %150, %152, %cst_54 {dimension_numbers = #tpu.dot_dimension_numbers<[1], [1], [0], [0], [0, 0, 1, 0], [], []>} : vector<8x8xbf16>, vector<8x8xbf16>, vector<8x8xf32> -> vector<8x8xf32>
    %cst_55 = arith.constant 0.353553385 : f32
    %156 = vector.broadcast %cst_55 : f32 to vector<8x8xf32>
    %157 = arith.mulf %155, %156 : vector<8x8xf32>
    %158 = arith.addf %157, %31 : vector<8x8xf32>
    %cst_56 = arith.constant dense<0xFF800000> : vector<8xf32>
    %159 = vector.multi_reduction <maximumf>, %158, %cst_56 [1] : vector<8x8xf32> to vector<8xf32>
    %160 = vector.shape_cast %159 : vector<8xf32> to vector<8x1xf32>
    %161 = vector.broadcast %160 : vector<8x1xf32> to vector<8x8xf32>
    %162 = arith.subf %158, %161 : vector<8x8xf32>
    %163 = math.exp %162 : vector<8x8xf32>
    %cst_57 = arith.constant dense<0.000000e+00> : vector<8xf32>
    %164 = vector.multi_reduction <add>, %163, %cst_57 [1] : vector<8x8xf32> to vector<8xf32>
    %165 = vector.shape_cast %164 : vector<8xf32> to vector<8x1xf32>
    %166 = tpu.reciprocal %165 {approx = true} : vector<8x1xf32> -> vector<8x1xf32>
    %167 = vector.broadcast %166 : vector<8x1xf32> to vector<8x8xf32>
    %168 = arith.mulf %163, %167 : vector<8x8xf32>
    %169 = arith.truncf %168 : vector<8x8xf32> to vector<8x8xbf16>
    %cst_58 = arith.constant dense<0.000000e+00> : vector<8x8xf32>
    %170 = tpu.matmul %169, %154, %cst_58 {dimension_numbers = #tpu.dot_dimension_numbers<[1], [0], [0], [1], [0, 0, 1, 1], [], []>} : vector<8x8xbf16>, vector<8x8xbf16>, vector<8x8xf32> -> vector<8x8xf32>
    %171 = vector.extract_strided_slice %124 {offsets = [0, 16], sizes = [8, 8], strides = [1, 1]} : vector<8x32xf32> to vector<8x8xf32>
    %172 = arith.truncf %171 : vector<8x8xf32> to vector<8x8xbf16>
    %173 = vector.extract_strided_slice %125 {offsets = [0, 16], sizes = [8, 8], strides = [1, 1]} : vector<8x32xf32> to vector<8x8xf32>
    %174 = arith.truncf %173 : vector<8x8xf32> to vector<8x8xbf16>
    %175 = vector.extract_strided_slice %126 {offsets = [0, 16], sizes = [8, 8], strides = [1, 1]} : vector<8x32xf32> to vector<8x8xf32>
    %176 = arith.truncf %175 : vector<8x8xf32> to vector<8x8xbf16>
    %cst_59 = arith.constant dense<0.000000e+00> : vector<8x8xf32>
    %177 = tpu.matmul %172, %174, %cst_59 {dimension_numbers = #tpu.dot_dimension_numbers<[1], [1], [0], [0], [0, 0, 1, 0], [], []>} : vector<8x8xbf16>, vector<8x8xbf16>, vector<8x8xf32> -> vector<8x8xf32>
    %cst_60 = arith.constant 0.353553385 : f32
    %178 = vector.broadcast %cst_60 : f32 to vector<8x8xf32>
    %179 = arith.mulf %177, %178 : vector<8x8xf32>
    %180 = arith.addf %179, %31 : vector<8x8xf32>
    %cst_61 = arith.constant dense<0xFF800000> : vector<8xf32>
    %181 = vector.multi_reduction <maximumf>, %180, %cst_61 [1] : vector<8x8xf32> to vector<8xf32>
    %182 = vector.shape_cast %181 : vector<8xf32> to vector<8x1xf32>
    %183 = vector.broadcast %182 : vector<8x1xf32> to vector<8x8xf32>
    %184 = arith.subf %180, %183 : vector<8x8xf32>
    %185 = math.exp %184 : vector<8x8xf32>
    %cst_62 = arith.constant dense<0.000000e+00> : vector<8xf32>
    %186 = vector.multi_reduction <add>, %185, %cst_62 [1] : vector<8x8xf32> to vector<8xf32>
    %187 = vector.shape_cast %186 : vector<8xf32> to vector<8x1xf32>
    %188 = tpu.reciprocal %187 {approx = true} : vector<8x1xf32> -> vector<8x1xf32>
    %189 = vector.broadcast %188 : vector<8x1xf32> to vector<8x8xf32>
    %190 = arith.mulf %185, %189 : vector<8x8xf32>
    %191 = arith.truncf %190 : vector<8x8xf32> to vector<8x8xbf16>
    %cst_63 = arith.constant dense<0.000000e+00> : vector<8x8xf32>
    %192 = tpu.matmul %191, %176, %cst_63 {dimension_numbers = #tpu.dot_dimension_numbers<[1], [0], [0], [1], [0, 0, 1, 1], [], []>} : vector<8x8xbf16>, vector<8x8xbf16>, vector<8x8xf32> -> vector<8x8xf32>
    %193 = vector.extract_strided_slice %124 {offsets = [0, 24], sizes = [8, 8], strides = [1, 1]} : vector<8x32xf32> to vector<8x8xf32>
    %194 = arith.truncf %193 : vector<8x8xf32> to vector<8x8xbf16>
    %195 = vector.extract_strided_slice %125 {offsets = [0, 24], sizes = [8, 8], strides = [1, 1]} : vector<8x32xf32> to vector<8x8xf32>
    %196 = arith.truncf %195 : vector<8x8xf32> to vector<8x8xbf16>
    %197 = vector.extract_strided_slice %126 {offsets = [0, 24], sizes = [8, 8], strides = [1, 1]} : vector<8x32xf32> to vector<8x8xf32>
    %198 = arith.truncf %197 : vector<8x8xf32> to vector<8x8xbf16>
    %cst_64 = arith.constant dense<0.000000e+00> : vector<8x8xf32>
    %199 = tpu.matmul %194, %196, %cst_64 {dimension_numbers = #tpu.dot_dimension_numbers<[1], [1], [0], [0], [0, 0, 1, 0], [], []>} : vector<8x8xbf16>, vector<8x8xbf16>, vector<8x8xf32> -> vector<8x8xf32>
    %cst_65 = arith.constant 0.353553385 : f32
    %200 = vector.broadcast %cst_65 : f32 to vector<8x8xf32>
    %201 = arith.mulf %199, %200 : vector<8x8xf32>
    %202 = arith.addf %201, %31 : vector<8x8xf32>
    %cst_66 = arith.constant dense<0xFF800000> : vector<8xf32>
    %203 = vector.multi_reduction <maximumf>, %202, %cst_66 [1] : vector<8x8xf32> to vector<8xf32>
    %204 = vector.shape_cast %203 : vector<8xf32> to vector<8x1xf32>
    %205 = vector.broadcast %204 : vector<8x1xf32> to vector<8x8xf32>
    %206 = arith.subf %202, %205 : vector<8x8xf32>
    %207 = math.exp %206 : vector<8x8xf32>
    %cst_67 = arith.constant dense<0.000000e+00> : vector<8xf32>
    %208 = vector.multi_reduction <add>, %207, %cst_67 [1] : vector<8x8xf32> to vector<8xf32>
    %209 = vector.shape_cast %208 : vector<8xf32> to vector<8x1xf32>
    %210 = tpu.reciprocal %209 {approx = true} : vector<8x1xf32> -> vector<8x1xf32>
    %211 = vector.broadcast %210 : vector<8x1xf32> to vector<8x8xf32>
    %212 = arith.mulf %207, %211 : vector<8x8xf32>
    %213 = arith.truncf %212 : vector<8x8xf32> to vector<8x8xbf16>
    %cst_68 = arith.constant dense<0.000000e+00> : vector<8x8xf32>
    %214 = tpu.matmul %213, %198, %cst_68 {dimension_numbers = #tpu.dot_dimension_numbers<[1], [0], [0], [1], [0, 0, 1, 1], [], []>} : vector<8x8xbf16>, vector<8x8xbf16>, vector<8x8xf32> -> vector<8x8xf32>
    %215 = tpu.concatenate %148, %170, %192, %214 in 1 : vector<8x8xf32>, vector<8x8xf32>, vector<8x8xf32>, vector<8x8xf32> -> vector<8x32xf32>
    %216 = tpu.concatenate %123, %215 in 0 : vector<8x32xf32>, vector<8x32xf32> -> vector<16x32xf32>
    %217 = arith.truncf %216 : vector<16x32xf32> to vector<16x32xbf16>
    %cst_69 = arith.constant dense<0.000000e+00> : vector<16x32xf32>
    %218 = tpu.matmul %217, %10, %cst_69 {dimension_numbers = #tpu.dot_dimension_numbers<[1], [0], [0], [1], [0, 0, 1, 1], [], []>} : vector<16x32xbf16>, vector<32x32xbf16>, vector<16x32xf32> -> vector<16x32xf32>
    %219 = vector.broadcast %11 : vector<1x32xf32> to vector<16x32xf32>
    %220 = arith.addf %218, %219 : vector<16x32xf32>
    %221 = arith.addf %1, %220 : vector<16x32xf32>
    %cst_70 = arith.constant dense<0.000000e+00> : vector<16xf32>
    %222 = vector.multi_reduction <add>, %221, %cst_70 [1] : vector<16x32xf32> to vector<16xf32>
    %223 = vector.shape_cast %222 : vector<16xf32> to vector<16x1xf32>
    %cst_71 = arith.constant 3.200000e+01 : f32
    %224 = vector.broadcast %cst_71 : f32 to vector<16x1xf32>
    %225 = arith.divf %223, %224 : vector<16x1xf32>
    %226 = vector.broadcast %225 : vector<16x1xf32> to vector<16x32xf32>
    %227 = arith.subf %221, %226 : vector<16x32xf32>
    %228 = arith.mulf %227, %227 : vector<16x32xf32>
    %cst_72 = arith.constant dense<0.000000e+00> : vector<16xf32>
    %229 = vector.multi_reduction <add>, %228, %cst_72 [1] : vector<16x32xf32> to vector<16xf32>
    %230 = vector.shape_cast %229 : vector<16xf32> to vector<16x1xf32>
    %cst_73 = arith.constant 3.200000e+01 : f32
    %231 = vector.broadcast %cst_73 : f32 to vector<16x1xf32>
    %232 = arith.divf %230, %231 : vector<16x1xf32>
    %233 = vector.broadcast %225 : vector<16x1xf32> to vector<16x32xf32>
    %234 = arith.subf %221, %233 : vector<16x32xf32>
    %cst_74 = arith.constant 9.99999974E-6 : f32
    %235 = vector.broadcast %cst_74 : f32 to vector<16x1xf32>
    %236 = arith.addf %232, %235 : vector<16x1xf32>
    %237 = math.rsqrt %236 : vector<16x1xf32>
    %238 = vector.broadcast %237 : vector<16x1xf32> to vector<16x32xf32>
    %239 = arith.mulf %234, %238 : vector<16x32xf32>
    %240 = vector.broadcast %12 : vector<1x32xf32> to vector<16x32xf32>
    %241 = arith.mulf %239, %240 : vector<16x32xf32>
    %242 = vector.broadcast %13 : vector<1x32xf32> to vector<16x32xf32>
    %243 = arith.addf %241, %242 : vector<16x32xf32>
    %c0_75 = arith.constant 0 : index
    %c0_76 = arith.constant 0 : index
    %244 = vector.load %arg13[%c0_75, %c0_76] : memref<32x32xbf16, #tpu.memory_space<vmem>>, vector<32x32xbf16>
    %c0_77 = arith.constant 0 : index
    %c0_78 = arith.constant 0 : index
    %245 = vector.load %arg14[%c0_77, %c0_78] : memref<1x32xf32, #tpu.memory_space<vmem>>, vector<1x32xf32>
    %c0_79 = arith.constant 0 : index
    %c0_80 = arith.constant 0 : index
    %246 = vector.load %arg15[%c0_79, %c0_80] : memref<32x32xbf16, #tpu.memory_space<vmem>>, vector<32x32xbf16>
    %c0_81 = arith.constant 0 : index
    %c0_82 = arith.constant 0 : index
    %247 = vector.load %arg16[%c0_81, %c0_82] : memref<1x32xf32, #tpu.memory_space<vmem>>, vector<1x32xf32>
    %c0_83 = arith.constant 0 : index
    %c0_84 = arith.constant 0 : index
    %248 = vector.load %arg17[%c0_83, %c0_84] : memref<32x32xbf16, #tpu.memory_space<vmem>>, vector<32x32xbf16>
    %c0_85 = arith.constant 0 : index
    %c0_86 = arith.constant 0 : index
    %249 = vector.load %arg18[%c0_85, %c0_86] : memref<1x32xf32, #tpu.memory_space<vmem>>, vector<1x32xf32>
    %c0_87 = arith.constant 0 : index
    %c0_88 = arith.constant 0 : index
    %250 = vector.load %arg19[%c0_87, %c0_88] : memref<32x32xbf16, #tpu.memory_space<vmem>>, vector<32x32xbf16>
    %c0_89 = arith.constant 0 : index
    %c0_90 = arith.constant 0 : index
    %251 = vector.load %arg20[%c0_89, %c0_90] : memref<1x32xf32, #tpu.memory_space<vmem>>, vector<1x32xf32>
    %c0_91 = arith.constant 0 : index
    %c0_92 = arith.constant 0 : index
    %252 = vector.load %arg21[%c0_91, %c0_92] : memref<1x32xf32, #tpu.memory_space<vmem>>, vector<1x32xf32>
    %c0_93 = arith.constant 0 : index
    %c0_94 = arith.constant 0 : index
    %253 = vector.load %arg22[%c0_93, %c0_94] : memref<1x32xf32, #tpu.memory_space<vmem>>, vector<1x32xf32>
    %254 = arith.truncf %243 : vector<16x32xf32> to vector<16x32xbf16>
    %cst_95 = arith.constant dense<0.000000e+00> : vector<16x32xf32>
    %255 = tpu.matmul %254, %244, %cst_95 {dimension_numbers = #tpu.dot_dimension_numbers<[1], [0], [0], [1], [0, 0, 1, 1], [], []>} : vector<16x32xbf16>, vector<32x32xbf16>, vector<16x32xf32> -> vector<16x32xf32>
    %256 = vector.broadcast %245 : vector<1x32xf32> to vector<16x32xf32>
    %257 = arith.addf %255, %256 : vector<16x32xf32>
    %258 = arith.truncf %3 : vector<32x32xf32> to vector<32x32xbf16>
    %cst_96 = arith.constant dense<0.000000e+00> : vector<32x32xf32>
    %259 = tpu.matmul %258, %246, %cst_96 {dimension_numbers = #tpu.dot_dimension_numbers<[1], [0], [0], [1], [0, 0, 1, 1], [], []>} : vector<32x32xbf16>, vector<32x32xbf16>, vector<32x32xf32> -> vector<32x32xf32>
    %260 = vector.broadcast %247 : vector<1x32xf32> to vector<32x32xf32>
    %261 = arith.addf %259, %260 : vector<32x32xf32>
    %262 = arith.truncf %3 : vector<32x32xf32> to vector<32x32xbf16>
    %cst_97 = arith.constant dense<0.000000e+00> : vector<32x32xf32>
    %263 = tpu.matmul %262, %248, %cst_97 {dimension_numbers = #tpu.dot_dimension_numbers<[1], [0], [0], [1], [0, 0, 1, 1], [], []>} : vector<32x32xbf16>, vector<32x32xbf16>, vector<32x32xf32> -> vector<32x32xf32>
    %264 = vector.broadcast %249 : vector<1x32xf32> to vector<32x32xf32>
    %265 = arith.addf %263, %264 : vector<32x32xf32>
    %266 = vector.extract_strided_slice %257 {offsets = [0, 0], sizes = [8, 32], strides = [1, 1]} : vector<16x32xf32> to vector<8x32xf32>
    %267 = vector.extract_strided_slice %261 {offsets = [0, 0], sizes = [16, 32], strides = [1, 1]} : vector<32x32xf32> to vector<16x32xf32>
    %268 = vector.extract_strided_slice %265 {offsets = [0, 0], sizes = [16, 32], strides = [1, 1]} : vector<32x32xf32> to vector<16x32xf32>
    %269 = vector.extract_strided_slice %266 {offsets = [0, 0], sizes = [8, 8], strides = [1, 1]} : vector<8x32xf32> to vector<8x8xf32>
    %270 = arith.truncf %269 : vector<8x8xf32> to vector<8x8xbf16>
    %271 = vector.extract_strided_slice %267 {offsets = [0, 0], sizes = [16, 8], strides = [1, 1]} : vector<16x32xf32> to vector<16x8xf32>
    %272 = arith.truncf %271 : vector<16x8xf32> to vector<16x8xbf16>
    %273 = vector.extract_strided_slice %268 {offsets = [0, 0], sizes = [16, 8], strides = [1, 1]} : vector<16x32xf32> to vector<16x8xf32>
    %274 = arith.truncf %273 : vector<16x8xf32> to vector<16x8xbf16>
    %cst_98 = arith.constant dense<0.000000e+00> : vector<8x16xf32>
    %275 = tpu.matmul %270, %272, %cst_98 {dimension_numbers = #tpu.dot_dimension_numbers<[1], [1], [0], [0], [0, 0, 1, 0], [], []>} : vector<8x8xbf16>, vector<16x8xbf16>, vector<8x16xf32> -> vector<8x16xf32>
    %cst_99 = arith.constant 0.353553385 : f32
    %276 = vector.broadcast %cst_99 : f32 to vector<8x16xf32>
    %277 = arith.mulf %275, %276 : vector<8x16xf32>
    %cst_100 = arith.constant dense<0xFF800000> : vector<8xf32>
    %278 = vector.multi_reduction <maximumf>, %277, %cst_100 [1] : vector<8x16xf32> to vector<8xf32>
    %279 = vector.shape_cast %278 : vector<8xf32> to vector<8x1xf32>
    %280 = vector.broadcast %279 : vector<8x1xf32> to vector<8x16xf32>
    %281 = arith.subf %277, %280 : vector<8x16xf32>
    %282 = math.exp %281 : vector<8x16xf32>
    %cst_101 = arith.constant dense<0.000000e+00> : vector<8xf32>
    %283 = vector.multi_reduction <add>, %282, %cst_101 [1] : vector<8x16xf32> to vector<8xf32>
    %284 = vector.shape_cast %283 : vector<8xf32> to vector<8x1xf32>
    %285 = tpu.reciprocal %284 {approx = true} : vector<8x1xf32> -> vector<8x1xf32>
    %286 = vector.broadcast %285 : vector<8x1xf32> to vector<8x16xf32>
    %287 = arith.mulf %282, %286 : vector<8x16xf32>
    %288 = arith.truncf %287 : vector<8x16xf32> to vector<8x16xbf16>
    %cst_102 = arith.constant dense<0.000000e+00> : vector<8x8xf32>
    %289 = tpu.matmul %288, %274, %cst_102 {dimension_numbers = #tpu.dot_dimension_numbers<[1], [0], [0], [1], [0, 0, 1, 1], [], []>} : vector<8x16xbf16>, vector<16x8xbf16>, vector<8x8xf32> -> vector<8x8xf32>
    %290 = vector.extract_strided_slice %266 {offsets = [0, 8], sizes = [8, 8], strides = [1, 1]} : vector<8x32xf32> to vector<8x8xf32>
    %291 = arith.truncf %290 : vector<8x8xf32> to vector<8x8xbf16>
    %292 = vector.extract_strided_slice %267 {offsets = [0, 8], sizes = [16, 8], strides = [1, 1]} : vector<16x32xf32> to vector<16x8xf32>
    %293 = arith.truncf %292 : vector<16x8xf32> to vector<16x8xbf16>
    %294 = vector.extract_strided_slice %268 {offsets = [0, 8], sizes = [16, 8], strides = [1, 1]} : vector<16x32xf32> to vector<16x8xf32>
    %295 = arith.truncf %294 : vector<16x8xf32> to vector<16x8xbf16>
    %cst_103 = arith.constant dense<0.000000e+00> : vector<8x16xf32>
    %296 = tpu.matmul %291, %293, %cst_103 {dimension_numbers = #tpu.dot_dimension_numbers<[1], [1], [0], [0], [0, 0, 1, 0], [], []>} : vector<8x8xbf16>, vector<16x8xbf16>, vector<8x16xf32> -> vector<8x16xf32>
    %cst_104 = arith.constant 0.353553385 : f32
    %297 = vector.broadcast %cst_104 : f32 to vector<8x16xf32>
    %298 = arith.mulf %296, %297 : vector<8x16xf32>
    %cst_105 = arith.constant dense<0xFF800000> : vector<8xf32>
    %299 = vector.multi_reduction <maximumf>, %298, %cst_105 [1] : vector<8x16xf32> to vector<8xf32>
    %300 = vector.shape_cast %299 : vector<8xf32> to vector<8x1xf32>
    %301 = vector.broadcast %300 : vector<8x1xf32> to vector<8x16xf32>
    %302 = arith.subf %298, %301 : vector<8x16xf32>
    %303 = math.exp %302 : vector<8x16xf32>
    %cst_106 = arith.constant dense<0.000000e+00> : vector<8xf32>
    %304 = vector.multi_reduction <add>, %303, %cst_106 [1] : vector<8x16xf32> to vector<8xf32>
    %305 = vector.shape_cast %304 : vector<8xf32> to vector<8x1xf32>
    %306 = tpu.reciprocal %305 {approx = true} : vector<8x1xf32> -> vector<8x1xf32>
    %307 = vector.broadcast %306 : vector<8x1xf32> to vector<8x16xf32>
    %308 = arith.mulf %303, %307 : vector<8x16xf32>
    %309 = arith.truncf %308 : vector<8x16xf32> to vector<8x16xbf16>
    %cst_107 = arith.constant dense<0.000000e+00> : vector<8x8xf32>
    %310 = tpu.matmul %309, %295, %cst_107 {dimension_numbers = #tpu.dot_dimension_numbers<[1], [0], [0], [1], [0, 0, 1, 1], [], []>} : vector<8x16xbf16>, vector<16x8xbf16>, vector<8x8xf32> -> vector<8x8xf32>
    %311 = vector.extract_strided_slice %266 {offsets = [0, 16], sizes = [8, 8], strides = [1, 1]} : vector<8x32xf32> to vector<8x8xf32>
    %312 = arith.truncf %311 : vector<8x8xf32> to vector<8x8xbf16>
    %313 = vector.extract_strided_slice %267 {offsets = [0, 16], sizes = [16, 8], strides = [1, 1]} : vector<16x32xf32> to vector<16x8xf32>
    %314 = arith.truncf %313 : vector<16x8xf32> to vector<16x8xbf16>
    %315 = vector.extract_strided_slice %268 {offsets = [0, 16], sizes = [16, 8], strides = [1, 1]} : vector<16x32xf32> to vector<16x8xf32>
    %316 = arith.truncf %315 : vector<16x8xf32> to vector<16x8xbf16>
    %cst_108 = arith.constant dense<0.000000e+00> : vector<8x16xf32>
    %317 = tpu.matmul %312, %314, %cst_108 {dimension_numbers = #tpu.dot_dimension_numbers<[1], [1], [0], [0], [0, 0, 1, 0], [], []>} : vector<8x8xbf16>, vector<16x8xbf16>, vector<8x16xf32> -> vector<8x16xf32>
    %cst_109 = arith.constant 0.353553385 : f32
    %318 = vector.broadcast %cst_109 : f32 to vector<8x16xf32>
    %319 = arith.mulf %317, %318 : vector<8x16xf32>
    %cst_110 = arith.constant dense<0xFF800000> : vector<8xf32>
    %320 = vector.multi_reduction <maximumf>, %319, %cst_110 [1] : vector<8x16xf32> to vector<8xf32>
    %321 = vector.shape_cast %320 : vector<8xf32> to vector<8x1xf32>
    %322 = vector.broadcast %321 : vector<8x1xf32> to vector<8x16xf32>
    %323 = arith.subf %319, %322 : vector<8x16xf32>
    %324 = math.exp %323 : vector<8x16xf32>
    %cst_111 = arith.constant dense<0.000000e+00> : vector<8xf32>
    %325 = vector.multi_reduction <add>, %324, %cst_111 [1] : vector<8x16xf32> to vector<8xf32>
    %326 = vector.shape_cast %325 : vector<8xf32> to vector<8x1xf32>
    %327 = tpu.reciprocal %326 {approx = true} : vector<8x1xf32> -> vector<8x1xf32>
    %328 = vector.broadcast %327 : vector<8x1xf32> to vector<8x16xf32>
    %329 = arith.mulf %324, %328 : vector<8x16xf32>
    %330 = arith.truncf %329 : vector<8x16xf32> to vector<8x16xbf16>
    %cst_112 = arith.constant dense<0.000000e+00> : vector<8x8xf32>
    %331 = tpu.matmul %330, %316, %cst_112 {dimension_numbers = #tpu.dot_dimension_numbers<[1], [0], [0], [1], [0, 0, 1, 1], [], []>} : vector<8x16xbf16>, vector<16x8xbf16>, vector<8x8xf32> -> vector<8x8xf32>
    %332 = vector.extract_strided_slice %266 {offsets = [0, 24], sizes = [8, 8], strides = [1, 1]} : vector<8x32xf32> to vector<8x8xf32>
    %333 = arith.truncf %332 : vector<8x8xf32> to vector<8x8xbf16>
    %334 = vector.extract_strided_slice %267 {offsets = [0, 24], sizes = [16, 8], strides = [1, 1]} : vector<16x32xf32> to vector<16x8xf32>
    %335 = arith.truncf %334 : vector<16x8xf32> to vector<16x8xbf16>
    %336 = vector.extract_strided_slice %268 {offsets = [0, 24], sizes = [16, 8], strides = [1, 1]} : vector<16x32xf32> to vector<16x8xf32>
    %337 = arith.truncf %336 : vector<16x8xf32> to vector<16x8xbf16>
    %cst_113 = arith.constant dense<0.000000e+00> : vector<8x16xf32>
    %338 = tpu.matmul %333, %335, %cst_113 {dimension_numbers = #tpu.dot_dimension_numbers<[1], [1], [0], [0], [0, 0, 1, 0], [], []>} : vector<8x8xbf16>, vector<16x8xbf16>, vector<8x16xf32> -> vector<8x16xf32>
    %cst_114 = arith.constant 0.353553385 : f32
    %339 = vector.broadcast %cst_114 : f32 to vector<8x16xf32>
    %340 = arith.mulf %338, %339 : vector<8x16xf32>
    %cst_115 = arith.constant dense<0xFF800000> : vector<8xf32>
    %341 = vector.multi_reduction <maximumf>, %340, %cst_115 [1] : vector<8x16xf32> to vector<8xf32>
    %342 = vector.shape_cast %341 : vector<8xf32> to vector<8x1xf32>
    %343 = vector.broadcast %342 : vector<8x1xf32> to vector<8x16xf32>
    %344 = arith.subf %340, %343 : vector<8x16xf32>
    %345 = math.exp %344 : vector<8x16xf32>
    %cst_116 = arith.constant dense<0.000000e+00> : vector<8xf32>
    %346 = vector.multi_reduction <add>, %345, %cst_116 [1] : vector<8x16xf32> to vector<8xf32>
    %347 = vector.shape_cast %346 : vector<8xf32> to vector<8x1xf32>
    %348 = tpu.reciprocal %347 {approx = true} : vector<8x1xf32> -> vector<8x1xf32>
    %349 = vector.broadcast %348 : vector<8x1xf32> to vector<8x16xf32>
    %350 = arith.mulf %345, %349 : vector<8x16xf32>
    %351 = arith.truncf %350 : vector<8x16xf32> to vector<8x16xbf16>
    %cst_117 = arith.constant dense<0.000000e+00> : vector<8x8xf32>
    %352 = tpu.matmul %351, %337, %cst_117 {dimension_numbers = #tpu.dot_dimension_numbers<[1], [0], [0], [1], [0, 0, 1, 1], [], []>} : vector<8x16xbf16>, vector<16x8xbf16>, vector<8x8xf32> -> vector<8x8xf32>
    %353 = tpu.concatenate %289, %310, %331, %352 in 1 : vector<8x8xf32>, vector<8x8xf32>, vector<8x8xf32>, vector<8x8xf32> -> vector<8x32xf32>
    %354 = vector.extract_strided_slice %257 {offsets = [8, 0], sizes = [8, 32], strides = [1, 1]} : vector<16x32xf32> to vector<8x32xf32>
    %355 = vector.extract_strided_slice %261 {offsets = [16, 0], sizes = [16, 32], strides = [1, 1]} : vector<32x32xf32> to vector<16x32xf32>
    %356 = vector.extract_strided_slice %265 {offsets = [16, 0], sizes = [16, 32], strides = [1, 1]} : vector<32x32xf32> to vector<16x32xf32>
    %357 = vector.extract_strided_slice %354 {offsets = [0, 0], sizes = [8, 8], strides = [1, 1]} : vector<8x32xf32> to vector<8x8xf32>
    %358 = arith.truncf %357 : vector<8x8xf32> to vector<8x8xbf16>
    %359 = vector.extract_strided_slice %355 {offsets = [0, 0], sizes = [16, 8], strides = [1, 1]} : vector<16x32xf32> to vector<16x8xf32>
    %360 = arith.truncf %359 : vector<16x8xf32> to vector<16x8xbf16>
    %361 = vector.extract_strided_slice %356 {offsets = [0, 0], sizes = [16, 8], strides = [1, 1]} : vector<16x32xf32> to vector<16x8xf32>
    %362 = arith.truncf %361 : vector<16x8xf32> to vector<16x8xbf16>
    %cst_118 = arith.constant dense<0.000000e+00> : vector<8x16xf32>
    %363 = tpu.matmul %358, %360, %cst_118 {dimension_numbers = #tpu.dot_dimension_numbers<[1], [1], [0], [0], [0, 0, 1, 0], [], []>} : vector<8x8xbf16>, vector<16x8xbf16>, vector<8x16xf32> -> vector<8x16xf32>
    %cst_119 = arith.constant 0.353553385 : f32
    %364 = vector.broadcast %cst_119 : f32 to vector<8x16xf32>
    %365 = arith.mulf %363, %364 : vector<8x16xf32>
    %cst_120 = arith.constant dense<0xFF800000> : vector<8xf32>
    %366 = vector.multi_reduction <maximumf>, %365, %cst_120 [1] : vector<8x16xf32> to vector<8xf32>
    %367 = vector.shape_cast %366 : vector<8xf32> to vector<8x1xf32>
    %368 = vector.broadcast %367 : vector<8x1xf32> to vector<8x16xf32>
    %369 = arith.subf %365, %368 : vector<8x16xf32>
    %370 = math.exp %369 : vector<8x16xf32>
    %cst_121 = arith.constant dense<0.000000e+00> : vector<8xf32>
    %371 = vector.multi_reduction <add>, %370, %cst_121 [1] : vector<8x16xf32> to vector<8xf32>
    %372 = vector.shape_cast %371 : vector<8xf32> to vector<8x1xf32>
    %373 = tpu.reciprocal %372 {approx = true} : vector<8x1xf32> -> vector<8x1xf32>
    %374 = vector.broadcast %373 : vector<8x1xf32> to vector<8x16xf32>
    %375 = arith.mulf %370, %374 : vector<8x16xf32>
    %376 = arith.truncf %375 : vector<8x16xf32> to vector<8x16xbf16>
    %cst_122 = arith.constant dense<0.000000e+00> : vector<8x8xf32>
    %377 = tpu.matmul %376, %362, %cst_122 {dimension_numbers = #tpu.dot_dimension_numbers<[1], [0], [0], [1], [0, 0, 1, 1], [], []>} : vector<8x16xbf16>, vector<16x8xbf16>, vector<8x8xf32> -> vector<8x8xf32>
    %378 = vector.extract_strided_slice %354 {offsets = [0, 8], sizes = [8, 8], strides = [1, 1]} : vector<8x32xf32> to vector<8x8xf32>
    %379 = arith.truncf %378 : vector<8x8xf32> to vector<8x8xbf16>
    %380 = vector.extract_strided_slice %355 {offsets = [0, 8], sizes = [16, 8], strides = [1, 1]} : vector<16x32xf32> to vector<16x8xf32>
    %381 = arith.truncf %380 : vector<16x8xf32> to vector<16x8xbf16>
    %382 = vector.extract_strided_slice %356 {offsets = [0, 8], sizes = [16, 8], strides = [1, 1]} : vector<16x32xf32> to vector<16x8xf32>
    %383 = arith.truncf %382 : vector<16x8xf32> to vector<16x8xbf16>
    %cst_123 = arith.constant dense<0.000000e+00> : vector<8x16xf32>
    %384 = tpu.matmul %379, %381, %cst_123 {dimension_numbers = #tpu.dot_dimension_numbers<[1], [1], [0], [0], [0, 0, 1, 0], [], []>} : vector<8x8xbf16>, vector<16x8xbf16>, vector<8x16xf32> -> vector<8x16xf32>
    %cst_124 = arith.constant 0.353553385 : f32
    %385 = vector.broadcast %cst_124 : f32 to vector<8x16xf32>
    %386 = arith.mulf %384, %385 : vector<8x16xf32>
    %cst_125 = arith.constant dense<0xFF800000> : vector<8xf32>
    %387 = vector.multi_reduction <maximumf>, %386, %cst_125 [1] : vector<8x16xf32> to vector<8xf32>
    %388 = vector.shape_cast %387 : vector<8xf32> to vector<8x1xf32>
    %389 = vector.broadcast %388 : vector<8x1xf32> to vector<8x16xf32>
    %390 = arith.subf %386, %389 : vector<8x16xf32>
    %391 = math.exp %390 : vector<8x16xf32>
    %cst_126 = arith.constant dense<0.000000e+00> : vector<8xf32>
    %392 = vector.multi_reduction <add>, %391, %cst_126 [1] : vector<8x16xf32> to vector<8xf32>
    %393 = vector.shape_cast %392 : vector<8xf32> to vector<8x1xf32>
    %394 = tpu.reciprocal %393 {approx = true} : vector<8x1xf32> -> vector<8x1xf32>
    %395 = vector.broadcast %394 : vector<8x1xf32> to vector<8x16xf32>
    %396 = arith.mulf %391, %395 : vector<8x16xf32>
    %397 = arith.truncf %396 : vector<8x16xf32> to vector<8x16xbf16>
    %cst_127 = arith.constant dense<0.000000e+00> : vector<8x8xf32>
    %398 = tpu.matmul %397, %383, %cst_127 {dimension_numbers = #tpu.dot_dimension_numbers<[1], [0], [0], [1], [0, 0, 1, 1], [], []>} : vector<8x16xbf16>, vector<16x8xbf16>, vector<8x8xf32> -> vector<8x8xf32>
    %399 = vector.extract_strided_slice %354 {offsets = [0, 16], sizes = [8, 8], strides = [1, 1]} : vector<8x32xf32> to vector<8x8xf32>
    %400 = arith.truncf %399 : vector<8x8xf32> to vector<8x8xbf16>
    %401 = vector.extract_strided_slice %355 {offsets = [0, 16], sizes = [16, 8], strides = [1, 1]} : vector<16x32xf32> to vector<16x8xf32>
    %402 = arith.truncf %401 : vector<16x8xf32> to vector<16x8xbf16>
    %403 = vector.extract_strided_slice %356 {offsets = [0, 16], sizes = [16, 8], strides = [1, 1]} : vector<16x32xf32> to vector<16x8xf32>
    %404 = arith.truncf %403 : vector<16x8xf32> to vector<16x8xbf16>
    %cst_128 = arith.constant dense<0.000000e+00> : vector<8x16xf32>
    %405 = tpu.matmul %400, %402, %cst_128 {dimension_numbers = #tpu.dot_dimension_numbers<[1], [1], [0], [0], [0, 0, 1, 0], [], []>} : vector<8x8xbf16>, vector<16x8xbf16>, vector<8x16xf32> -> vector<8x16xf32>
    %cst_129 = arith.constant 0.353553385 : f32
    %406 = vector.broadcast %cst_129 : f32 to vector<8x16xf32>
    %407 = arith.mulf %405, %406 : vector<8x16xf32>
    %cst_130 = arith.constant dense<0xFF800000> : vector<8xf32>
    %408 = vector.multi_reduction <maximumf>, %407, %cst_130 [1] : vector<8x16xf32> to vector<8xf32>
    %409 = vector.shape_cast %408 : vector<8xf32> to vector<8x1xf32>
    %410 = vector.broadcast %409 : vector<8x1xf32> to vector<8x16xf32>
    %411 = arith.subf %407, %410 : vector<8x16xf32>
    %412 = math.exp %411 : vector<8x16xf32>
    %cst_131 = arith.constant dense<0.000000e+00> : vector<8xf32>
    %413 = vector.multi_reduction <add>, %412, %cst_131 [1] : vector<8x16xf32> to vector<8xf32>
    %414 = vector.shape_cast %413 : vector<8xf32> to vector<8x1xf32>
    %415 = tpu.reciprocal %414 {approx = true} : vector<8x1xf32> -> vector<8x1xf32>
    %416 = vector.broadcast %415 : vector<8x1xf32> to vector<8x16xf32>
    %417 = arith.mulf %412, %416 : vector<8x16xf32>
    %418 = arith.truncf %417 : vector<8x16xf32> to vector<8x16xbf16>
    %cst_132 = arith.constant dense<0.000000e+00> : vector<8x8xf32>
    %419 = tpu.matmul %418, %404, %cst_132 {dimension_numbers = #tpu.dot_dimension_numbers<[1], [0], [0], [1], [0, 0, 1, 1], [], []>} : vector<8x16xbf16>, vector<16x8xbf16>, vector<8x8xf32> -> vector<8x8xf32>
    %420 = vector.extract_strided_slice %354 {offsets = [0, 24], sizes = [8, 8], strides = [1, 1]} : vector<8x32xf32> to vector<8x8xf32>
    %421 = arith.truncf %420 : vector<8x8xf32> to vector<8x8xbf16>
    %422 = vector.extract_strided_slice %355 {offsets = [0, 24], sizes = [16, 8], strides = [1, 1]} : vector<16x32xf32> to vector<16x8xf32>
    %423 = arith.truncf %422 : vector<16x8xf32> to vector<16x8xbf16>
    %424 = vector.extract_strided_slice %356 {offsets = [0, 24], sizes = [16, 8], strides = [1, 1]} : vector<16x32xf32> to vector<16x8xf32>
    %425 = arith.truncf %424 : vector<16x8xf32> to vector<16x8xbf16>
    %cst_133 = arith.constant dense<0.000000e+00> : vector<8x16xf32>
    %426 = tpu.matmul %421, %423, %cst_133 {dimension_numbers = #tpu.dot_dimension_numbers<[1], [1], [0], [0], [0, 0, 1, 0], [], []>} : vector<8x8xbf16>, vector<16x8xbf16>, vector<8x16xf32> -> vector<8x16xf32>
    %cst_134 = arith.constant 0.353553385 : f32
    %427 = vector.broadcast %cst_134 : f32 to vector<8x16xf32>
    %428 = arith.mulf %426, %427 : vector<8x16xf32>
    %cst_135 = arith.constant dense<0xFF800000> : vector<8xf32>
    %429 = vector.multi_reduction <maximumf>, %428, %cst_135 [1] : vector<8x16xf32> to vector<8xf32>
    %430 = vector.shape_cast %429 : vector<8xf32> to vector<8x1xf32>
    %431 = vector.broadcast %430 : vector<8x1xf32> to vector<8x16xf32>
    %432 = arith.subf %428, %431 : vector<8x16xf32>
    %433 = math.exp %432 : vector<8x16xf32>
    %cst_136 = arith.constant dense<0.000000e+00> : vector<8xf32>
    %434 = vector.multi_reduction <add>, %433, %cst_136 [1] : vector<8x16xf32> to vector<8xf32>
    %435 = vector.shape_cast %434 : vector<8xf32> to vector<8x1xf32>
    %436 = tpu.reciprocal %435 {approx = true} : vector<8x1xf32> -> vector<8x1xf32>
    %437 = vector.broadcast %436 : vector<8x1xf32> to vector<8x16xf32>
    %438 = arith.mulf %433, %437 : vector<8x16xf32>
    %439 = arith.truncf %438 : vector<8x16xf32> to vector<8x16xbf16>
    %cst_137 = arith.constant dense<0.000000e+00> : vector<8x8xf32>
    %440 = tpu.matmul %439, %425, %cst_137 {dimension_numbers = #tpu.dot_dimension_numbers<[1], [0], [0], [1], [0, 0, 1, 1], [], []>} : vector<8x16xbf16>, vector<16x8xbf16>, vector<8x8xf32> -> vector<8x8xf32>
    %441 = tpu.concatenate %377, %398, %419, %440 in 1 : vector<8x8xf32>, vector<8x8xf32>, vector<8x8xf32>, vector<8x8xf32> -> vector<8x32xf32>
    %442 = tpu.concatenate %353, %441 in 0 : vector<8x32xf32>, vector<8x32xf32> -> vector<16x32xf32>
    %443 = arith.truncf %442 : vector<16x32xf32> to vector<16x32xbf16>
    %cst_138 = arith.constant dense<0.000000e+00> : vector<16x32xf32>
    %444 = tpu.matmul %443, %250, %cst_138 {dimension_numbers = #tpu.dot_dimension_numbers<[1], [0], [0], [1], [0, 0, 1, 1], [], []>} : vector<16x32xbf16>, vector<32x32xbf16>, vector<16x32xf32> -> vector<16x32xf32>
    %445 = vector.broadcast %251 : vector<1x32xf32> to vector<16x32xf32>
    %446 = arith.addf %444, %445 : vector<16x32xf32>
    %447 = arith.addf %243, %446 : vector<16x32xf32>
    %cst_139 = arith.constant dense<0.000000e+00> : vector<16xf32>
    %448 = vector.multi_reduction <add>, %447, %cst_139 [1] : vector<16x32xf32> to vector<16xf32>
    %449 = vector.shape_cast %448 : vector<16xf32> to vector<16x1xf32>
    %cst_140 = arith.constant 3.200000e+01 : f32
    %450 = vector.broadcast %cst_140 : f32 to vector<16x1xf32>
    %451 = arith.divf %449, %450 : vector<16x1xf32>
    %452 = vector.broadcast %451 : vector<16x1xf32> to vector<16x32xf32>
    %453 = arith.subf %447, %452 : vector<16x32xf32>
    %454 = arith.mulf %453, %453 : vector<16x32xf32>
    %cst_141 = arith.constant dense<0.000000e+00> : vector<16xf32>
    %455 = vector.multi_reduction <add>, %454, %cst_141 [1] : vector<16x32xf32> to vector<16xf32>
    %456 = vector.shape_cast %455 : vector<16xf32> to vector<16x1xf32>
    %cst_142 = arith.constant 3.200000e+01 : f32
    %457 = vector.broadcast %cst_142 : f32 to vector<16x1xf32>
    %458 = arith.divf %456, %457 : vector<16x1xf32>
    %459 = vector.broadcast %451 : vector<16x1xf32> to vector<16x32xf32>
    %460 = arith.subf %447, %459 : vector<16x32xf32>
    %cst_143 = arith.constant 9.99999974E-6 : f32
    %461 = vector.broadcast %cst_143 : f32 to vector<16x1xf32>
    %462 = arith.addf %458, %461 : vector<16x1xf32>
    %463 = math.rsqrt %462 : vector<16x1xf32>
    %464 = vector.broadcast %463 : vector<16x1xf32> to vector<16x32xf32>
    %465 = arith.mulf %460, %464 : vector<16x32xf32>
    %466 = vector.broadcast %252 : vector<1x32xf32> to vector<16x32xf32>
    %467 = arith.mulf %465, %466 : vector<16x32xf32>
    %468 = vector.broadcast %253 : vector<1x32xf32> to vector<16x32xf32>
    %469 = arith.addf %467, %468 : vector<16x32xf32>
    %470 = arith.truncf %469 : vector<16x32xf32> to vector<16x32xbf16>
    %c0_144 = arith.constant 0 : index
    %c0_145 = arith.constant 0 : index
    %471 = vector.load %arg23[%c0_144, %c0_145] : memref<32x64xbf16, #tpu.memory_space<vmem>>, vector<32x64xbf16>
    %cst_146 = arith.constant dense<0.000000e+00> : vector<16x64xf32>
    %472 = tpu.matmul %470, %471, %cst_146 {dimension_numbers = #tpu.dot_dimension_numbers<[1], [0], [0], [1], [0, 0, 1, 1], [], []>} : vector<16x32xbf16>, vector<32x64xbf16>, vector<16x64xf32> -> vector<16x64xf32>
    %c0_147 = arith.constant 0 : index
    %c0_148 = arith.constant 0 : index
    %473 = vector.load %arg24[%c0_147, %c0_148] : memref<1x64xf32, #tpu.memory_space<vmem>>, vector<1x64xf32>
    %474 = vector.broadcast %473 : vector<1x64xf32> to vector<16x64xf32>
    %475 = arith.addf %472, %474 : vector<16x64xf32>
    %476 = arith.mulf %475, %475 : vector<16x64xf32>
    %477 = arith.mulf %475, %476 : vector<16x64xf32>
    %cst_149 = arith.constant 4.471500e-02 : f32
    %478 = vector.broadcast %cst_149 : f32 to vector<16x64xf32>
    %479 = arith.mulf %478, %477 : vector<16x64xf32>
    %480 = arith.addf %475, %479 : vector<16x64xf32>
    %cst_150 = arith.constant 0.797884583 : f32
    %481 = vector.broadcast %cst_150 : f32 to vector<16x64xf32>
    %482 = arith.mulf %481, %480 : vector<16x64xf32>
    %483 = math.tanh %482 : vector<16x64xf32>
    %cst_151 = arith.constant 1.000000e+00 : f32
    %484 = vector.broadcast %cst_151 : f32 to vector<16x64xf32>
    %485 = arith.addf %484, %483 : vector<16x64xf32>
    %cst_152 = arith.constant 5.000000e-01 : f32
    %486 = vector.broadcast %cst_152 : f32 to vector<16x64xf32>
    %487 = arith.mulf %486, %485 : vector<16x64xf32>
    %488 = arith.mulf %475, %487 : vector<16x64xf32>
    %489 = arith.truncf %488 : vector<16x64xf32> to vector<16x64xbf16>
    %c0_153 = arith.constant 0 : index
    %c0_154 = arith.constant 0 : index
    %490 = vector.load %arg25[%c0_153, %c0_154] : memref<64x32xbf16, #tpu.memory_space<vmem>>, vector<64x32xbf16>
    %cst_155 = arith.constant dense<0.000000e+00> : vector<16x32xf32>
    %491 = tpu.matmul %489, %490, %cst_155 {dimension_numbers = #tpu.dot_dimension_numbers<[1], [0], [0], [1], [0, 0, 1, 1], [], []>} : vector<16x64xbf16>, vector<64x32xbf16>, vector<16x32xf32> -> vector<16x32xf32>
    %c0_156 = arith.constant 0 : index
    %c0_157 = arith.constant 0 : index
    %492 = vector.load %arg26[%c0_156, %c0_157] : memref<1x32xf32, #tpu.memory_space<vmem>>, vector<1x32xf32>
    %493 = vector.broadcast %492 : vector<1x32xf32> to vector<16x32xf32>
    %494 = arith.addf %491, %493 : vector<16x32xf32>
    %495 = arith.addf %469, %494 : vector<16x32xf32>
    %c0_158 = arith.constant 0 : index
    %c0_159 = arith.constant 0 : index
    %496 = vector.load %arg27[%c0_158, %c0_159] : memref<1x32xf32, #tpu.memory_space<vmem>>, vector<1x32xf32>
    %c0_160 = arith.constant 0 : index
    %c0_161 = arith.constant 0 : index
    %497 = vector.load %arg28[%c0_160, %c0_161] : memref<1x32xf32, #tpu.memory_space<vmem>>, vector<1x32xf32>
    %cst_162 = arith.constant dense<0.000000e+00> : vector<16xf32>
    %498 = vector.multi_reduction <add>, %495, %cst_162 [1] : vector<16x32xf32> to vector<16xf32>
    %499 = vector.shape_cast %498 : vector<16xf32> to vector<16x1xf32>
    %cst_163 = arith.constant 3.200000e+01 : f32
    %500 = vector.broadcast %cst_163 : f32 to vector<16x1xf32>
    %501 = arith.divf %499, %500 : vector<16x1xf32>
    %502 = vector.broadcast %501 : vector<16x1xf32> to vector<16x32xf32>
    %503 = arith.subf %495, %502 : vector<16x32xf32>
    %504 = arith.mulf %503, %503 : vector<16x32xf32>
    %cst_164 = arith.constant dense<0.000000e+00> : vector<16xf32>
    %505 = vector.multi_reduction <add>, %504, %cst_164 [1] : vector<16x32xf32> to vector<16xf32>
    %506 = vector.shape_cast %505 : vector<16xf32> to vector<16x1xf32>
    %cst_165 = arith.constant 3.200000e+01 : f32
    %507 = vector.broadcast %cst_165 : f32 to vector<16x1xf32>
    %508 = arith.divf %506, %507 : vector<16x1xf32>
    %509 = vector.broadcast %501 : vector<16x1xf32> to vector<16x32xf32>
    %510 = arith.subf %495, %509 : vector<16x32xf32>
    %cst_166 = arith.constant 9.99999974E-6 : f32
    %511 = vector.broadcast %cst_166 : f32 to vector<16x1xf32>
    %512 = arith.addf %508, %511 : vector<16x1xf32>
    %513 = math.rsqrt %512 : vector<16x1xf32>
    %514 = vector.broadcast %513 : vector<16x1xf32> to vector<16x32xf32>
    %515 = arith.mulf %510, %514 : vector<16x32xf32>
    %516 = vector.broadcast %496 : vector<1x32xf32> to vector<16x32xf32>
    %517 = arith.mulf %515, %516 : vector<16x32xf32>
    %518 = vector.broadcast %497 : vector<1x32xf32> to vector<16x32xf32>
    %519 = arith.addf %517, %518 : vector<16x32xf32>
    %520 = vector.shape_cast %519 : vector<16x32xf32> to vector<2x8x32xf32>
    %c0_167 = arith.constant 0 : index
    %c0_168 = arith.constant 0 : index
    %c0_169 = arith.constant 0 : index
    %521 = vector.load %arg29[%c0_167, %c0_168, %c0_169] : memref<2x8x32xf32, #tpu.memory_space<vmem>>, vector<2x8x32xf32>
    tpu.vector_store %arg29[%c0_167, %c0_168, %c0_169], %520 {strides = array<i32>} : memref<2x8x32xf32, #tpu.memory_space<vmem>>, vector<2x8x32xf32>,
    return
  }
  func.func @transform_0(%arg0: i32) -> (i32, i32, i32) {
    %c0_i32 = arith.constant 0 : i32
    %c0_i32_0 = arith.constant 0 : i32
    %c0_i32_1 = arith.constant 0 : i32
    %c0_i32_2 = arith.constant 0 : i32
    return %c0_i32, %c0_i32_0, %c0_i32_1 : i32, i32, i32
  }
  func.func @transform_1(%arg0: i32) -> (i32, i32, i32) {
    %c0_i32 = arith.constant 0 : i32
    %c0_i32_0 = arith.constant 0 : i32
    %c0_i32_1 = arith.constant 0 : i32
    %c0_i32_2 = arith.constant 0 : i32
    return %c0_i32, %c0_i32_0, %c0_i32_1 : i32, i32, i32
  }
  func.func @transform_2(%arg0: i32) -> (i32, i32) {
    %c0_i32 = arith.constant 0 : i32
    %c0_i32_0 = arith.constant 0 : i32
    %c0_i32_1 = arith.constant 0 : i32
    return %c0_i32, %c0_i32_0 : i32, i32
  }
  func.func @transform_3(%arg0: i32) -> (i32, i32) {
    %c0_i32 = arith.constant 0 : i32
    %c0_i32_0 = arith.constant 0 : i32
    %c0_i32_1 = arith.constant 0 : i32
    return %c0_i32, %c0_i32_0 : i32, i32
  }
  func.func @transform_4(%arg0: i32) -> (i32, i32) {
    %c0_i32 = arith.constant 0 : i32
    %c0_i32_0 = arith.constant 0 : i32
    %c0_i32_1 = arith.constant 0 : i32
    return %c0_i32, %c0_i32_0 : i32, i32
  }
  func.func @transform_5(%arg0: i32) -> (i32, i32) {
    %c0_i32 = arith.constant 0 : i32
    %c0_i32_0 = arith.constant 0 : i32
    %c0_i32_1 = arith.constant 0 : i32
    return %c0_i32, %c0_i32_0 : i32, i32
  }
  func.func @transform_6(%arg0: i32) -> (i32, i32) {
    %c0_i32 = arith.constant 0 : i32
    %c0_i32_0 = arith.constant 0 : i32
    %c0_i32_1 = arith.constant 0 : i32
    return %c0_i32, %c0_i32_0 : i32, i32
  }
  func.func @transform_7(%arg0: i32) -> (i32, i32) {
    %c0_i32 = arith.constant 0 : i32
    %c0_i32_0 = arith.constant 0 : i32
    %c0_i32_1 = arith.constant 0 : i32
    return %c0_i32, %c0_i32_0 : i32, i32
  }
  func.func @transform_8(%arg0: i32) -> (i32, i32) {
    %c0_i32 = arith.constant 0 : i32
    %c0_i32_0 = arith.constant 0 : i32
    %c0_i32_1 = arith.constant 0 : i32
    return %c0_i32, %c0_i32_0 : i32, i32
  }
  func.func @transform_9(%arg0: i32) -> (i32, i32) {
    %c0_i32 = arith.constant 0 : i32
    %c0_i32_0 = arith.constant 0 : i32
    %c0_i32_1 = arith.constant 0 : i32
    return %c0_i32, %c0_i32_0 : i32, i32
  }
  func.func @transform_10(%arg0: i32) -> (i32, i32) {
    %c0_i32 = arith.constant 0 : i32
    %c0_i32_0 = arith.constant 0 : i32
    %c0_i32_1 = arith.constant 0 : i32
    return %c0_i32, %c0_i32_0 : i32, i32
  }
  func.func @transform_11(%arg0: i32) -> (i32, i32) {
    %c0_i32 = arith.constant 0 : i32
    %c0_i32_0 = arith.constant 0 : i32
    %c0_i32_1 = arith.constant 0 : i32
    return %c0_i32, %c0_i32_0 : i32, i32
  }
  func.func @transform_12(%arg0: i32) -> (i32, i32) {
    %c0_i32 = arith.constant 0 : i32
    %c0_i32_0 = arith.constant 0 : i32
    %c0_i32_1 = arith.constant 0 : i32
    return %c0_i32, %c0_i32_0 : i32, i32
  }
  func.func @transform_13(%arg0: i32) -> (i32, i32) {
    %c0_i32 = arith.constant 0 : i32
    %c0_i32_0 = arith.constant 0 : i32
    %c0_i32_1 = arith.constant 0 : i32
    return %c0_i32, %c0_i32_0 : i32, i32
  }
  func.func @transform_14(%arg0: i32) -> (i32, i32) {
    %c0_i32 = arith.constant 0 : i32
    %c0_i32_0 = arith.constant 0 : i32
    %c0_i32_1 = arith.constant 0 : i32
    return %c0_i32, %c0_i32_0 : i32, i32
  }
  func.func @transform_15(%arg0: i32) -> (i32, i32) {
    %c0_i32 = arith.constant 0 : i32
    %c0_i32_0 = arith.constant 0 : i32
    %c0_i32_1 = arith.constant 0 : i32
    return %c0_i32, %c0_i32_0 : i32, i32
  }
  func.func @transform_16(%arg0: i32) -> (i32, i32) {
    %c0_i32 = arith.constant 0 : i32
    %c0_i32_0 = arith.constant 0 : i32
    %c0_i32_1 = arith.constant 0 : i32
    return %c0_i32, %c0_i32_0 : i32, i32
  }
  func.func @transform_17(%arg0: i32) -> (i32, i32) {
    %c0_i32 = arith.constant 0 : i32
    %c0_i32_0 = arith.constant 0 : i32
    %c0_i32_1 = arith.constant 0 : i32
    return %c0_i32, %c0_i32_0 : i32, i32
  }
  func.func @transform_18(%arg0: i32) -> (i32, i32) {
    %c0_i32 = arith.constant 0 : i32
    %c0_i32_0 = arith.constant 0 : i32
    %c0_i32_1 = arith.constant 0 : i32
    return %c0_i32, %c0_i32_0 : i32, i32
  }
  func.func @transform_19(%arg0: i32) -> (i32, i32) {
    %c0_i32 = arith.constant 0 : i32
    %c0_i32_0 = arith.constant 0 : i32
    %c0_i32_1 = arith.constant 0 : i32
    return %c0_i32, %c0_i32_0 : i32, i32
  }
  func.func @transform_20(%arg0: i32) -> (i32, i32) {
    %c0_i32 = arith.constant 0 : i32
    %c0_i32_0 = arith.constant 0 : i32
    %c0_i32_1 = arith.constant 0 : i32
    return %c0_i32, %c0_i32_0 : i32, i32
  }
  func.func @transform_21(%arg0: i32) -> (i32, i32) {
    %c0_i32 = arith.constant 0 : i32
    %c0_i32_0 = arith.constant 0 : i32
    %c0_i32_1 = arith.constant 0 : i32
    return %c0_i32, %c0_i32_0 : i32, i32
  }
  func.func @transform_22(%arg0: i32) -> (i32, i32) {
    %c0_i32 = arith.constant 0 : i32
    %c0_i32_0 = arith.constant 0 : i32
    %c0_i32_1 = arith.constant 0 : i32
    return %c0_i32, %c0_i32_0 : i32, i32
  }
  func.func @transform_23(%arg0: i32) -> (i32, i32) {
    %c0_i32 = arith.constant 0 : i32
    %c0_i32_0 = arith.constant 0 : i32
    %c0_i32_1 = arith.constant 0 : i32
    return %c0_i32, %c0_i32_0 : i32, i32
  }
  func.func @transform_24(%arg0: i32) -> (i32, i32) {
    %c0_i32 = arith.constant 0 : i32
    %c0_i32_0 = arith.constant 0 : i32
    %c0_i32_1 = arith.constant 0 : i32
    return %c0_i32, %c0_i32_0 : i32, i32
  }
  func.func @transform_25(%arg0: i32) -> (i32, i32) {
    %c0_i32 = arith.constant 0 : i32
    %c0_i32_0 = arith.constant 0 : i32
    %c0_i32_1 = arith.constant 0 : i32
    return %c0_i32, %c0_i32_0 : i32, i32
  }
  func.func @transform_26(%arg0: i32) -> (i32, i32) {
    %c0_i32 = arith.constant 0 : i32
    %c0_i32_0 = arith.constant 0 : i32
    %c0_i32_1 = arith.constant 0 : i32
    return %c0_i32, %c0_i32_0 : i32, i32
  }
  func.func @transform_27(%arg0: i32) -> (i32, i32) {
    %c0_i32 = arith.constant 0 : i32
    %c0_i32_0 = arith.constant 0 : i32
    %c0_i32_1 = arith.constant 0 : i32
    return %c0_i32, %c0_i32_0 : i32, i32
  }
  func.func @transform_28(%arg0: i32) -> (i32, i32, i32) {
    %c0_i32 = arith.constant 0 : i32
    %c0_i32_0 = arith.constant 0 : i32
    %c0_i32_1 = arith.constant 0 : i32
    %c0_i32_2 = arith.constant 0 : i32
    return %c0_i32, %c0_i32_0, %c0_i32_1 : i32, i32, i32
  }
}

</mosaic_0001>

<bundles_post_ra>
// kernel: tpu_custom_call.1
= control target key start
LH: loop header
LB: loop body
LE: loop exit
PB: predicated region body
PF: predicated region fallthrough
CT: control target
= control target key end

     0   :  { %s3242_s0 = inlined_call_operand.vmem [shape: f32[2,8,32], index: 0, kind: input, shape index: {}]   ;;  %s3243_s1 = inlined_call_operand.vmem [shape: f32[2,16,32], index: 1, kind: input, shape index: {}]   ;;  %s3244_s2 = inlined_call_operand.hbm [shape: bf16[32,32], index: 2, kind: input, shape index: {}]   ;;  %s3245_s3 = inlined_call_operand.vmem [shape: f32[1,32], index: 3, kind: input, shape index: {}]   ;;  %s3246_s4 = inlined_call_operand.hbm [shape: bf16[32,32], index: 4, kind: input, shape index: {}]   ;;  %s3247_s5 = inlined_call_operand.vmem [shape: f32[1,32], index: 5, kind: input, shape index: {}]   ;;  %s3248_s6 = inlined_call_operand.hbm [shape: bf16[32,32], index: 6, kind: input, shape index: {}]   ;;  %s3249_s7 = inlined_call_operand.vmem [shape: f32[1,32], index: 7, kind: input, shape index: {}]   ;;  %s3250_s8 = inlined_call_operand.hbm [shape: bf16[32,32], index: 8, kind: input, shape index: {}]   ;;  %s3251_s9 = inlined_call_operand.vmem [shape: f32[1,32], index: 9, kind: input, shape index: {}]   ;;  %s3252_s10 = inlined_call_operand.vmem [shape: f32[1,32], index: 10, kind: input, shape index: {}]   ;;  %s3253_s11 = inlined_call_operand.vmem [shape: f32[1,32], index: 11, kind: input, shape index: {}]   ;;  %s3254_s12 = inlined_call_operand.hbm [shape: bf16[32,32], index: 12, kind: input, shape index: {}]   ;;  %s3255_s13 = inlined_call_operand.vmem [shape: f32[1,32], index: 13, kind: input, shape index: {}]   ;;  %s3256_s14 = inlined_call_operand.hbm [shape: bf16[32,32], index: 14, kind: input, shape index: {}]   ;;  %s3257_s15 = inlined_call_operand.hbm [shape: f32[1,32], index: 15, kind: input, shape index: {}]   ;;  %s3258_s16 = inlined_call_operand.hbm [shape: bf16[32,32], index: 16, kind: input, shape index: {}]   ;;  %s3259_s17 = inlined_call_operand.hbm [shape: f32[1,32], index: 17, kind: input, shape index: {}]   ;;  %s3260_s18 = inlined_call_operand.hbm [shape: bf16[32,32], index: 18, kind: input, shape index: {}]   ;;  %s3261_s19 = inlined_call_operand.hbm [shape: f32[1,32], index: 19, kind: input, shape index: {}]   ;;  %s3262_s20 = inlined_call_operand.hbm [shape: f32[1,32], index: 20, kind: input, shape index: {}]   ;;  %s3263_s21 = inlined_call_operand.hbm [shape: f32[1,32], index: 21, kind: input, shape index: {}]   ;;  %s3264_s22 = inlined_call_operand.hbm [shape: bf16[32,64], index: 22, kind: input, shape index: {}]   ;;  %s3265_s23 = inlined_call_operand.hbm [shape: f32[1,64], index: 23, kind: input, shape index: {}]   ;;  %s3266_s24 = inlined_call_operand.vmem [shape: bf16[64,32], index: 24, kind: input, shape index: {}]   ;;  %s3267_s25 = inlined_call_operand.vmem [shape: f32[1,32], index: 25, kind: input, shape index: {}]   ;;  %s3268_s26 = inlined_call_operand.hbm [shape: f32[1,32], index: 26, kind: input, shape index: {}]   ;;  %s3269_s27 = inlined_call_operand.vmem [shape: f32[1,32], index: 27, kind: input, shape index: {}]   ;;  %s3270_s28 = inlined_call_operand.hbm [shape: f32[2,8,32], index: 28, kind: output, shape index: {}]  }
   0x1   :  { %3273 = sst [smem:[#allocation39_spill]] %s3242_s0 }
   0x2   :  { %3274 = sst [smem:[#allocation40_spill]] %s3243_s1 }
   0x3   :  { %3275 = sst [smem:[#allocation41_spill]] %s3244_s2 }
   0x4   :  { %3276 = sst [smem:[#allocation42_spill]] %s3245_s3 }
   0x5   :  { %3277 = sst [smem:[#allocation43_spill]] %s3246_s4 }
   0x6   :  { %3278 = sst [smem:[#allocation44_spill]] %s3247_s5 }
   0x7   :  { %3279 = sst [smem:[#allocation45_spill]] %s3248_s6 }
   0x8   :  { %3280 = sst [smem:[#allocation46_spill]] %s3249_s7 }
   0x9   :  { %3281 = sst [smem:[#allocation47_spill]] %s3250_s8 }
   0xa   :  { %3282 = sst [smem:[#allocation48_spill]] %s3251_s9 }
   0xb   :  { %3283 = sst [smem:[#allocation49_spill]] %s3252_s10 }
   0xc   :  { %3284 = sst [smem:[#allocation50_spill]] %s3253_s11 }
   0xd   :  { %3285 = sst [smem:[#allocation51_spill]] %s3254_s12 }
   0xe   :  { %33 = vsyncpa [#allocation3], 0 }
   0xf   :  { %34 = vsyncpa [#allocation6], 0 }
  0x10   :  { %35 = vsyncpa [#allocation9], 0 }
  0x11   :  { %36 = vsyncpa [#allocation12], 0 }
  0x12   :  { %37 = vsyncpa [#allocation15], 0 }
  0x13   :  { %38 = vsyncpa [#allocation18], 0 }
  0x14   :  { %39 = vsyncpa [#allocation21], 0 }
  0x15   :  { %40 = vsyncpa [#allocation24], 0 }
  0x16   :  { %41 = vsyncpa [#allocation27], 0 }
  0x17   :  { %42 = vsyncpa [#allocation4], 0  ;;  %s3286_s9 = sld [smem:[#allocation43_spill]]  ;;  %s2670_s3 = smov [#allocation5]  }
  0x18   :  { %s68_s6 = sshll.u32 %s2670_s3, 4  ;;  %s3287_s11 = sld [smem:[#allocation47_spill]]  ;;  %s69_s6 = int_to_ptr.vmem [resolvable:$true] %s68_s6 }
  0x19   :  { %s2671_s2 = smov 64   ;;  %s2672_s7 = smov 4  }
  0x1a   :  { %s2673_s12 = smov [#allocation8]   ;;  %s130_s5 = sshll.u32 %s3256_s14, 4  ;;  %s131_s5 = int_to_ptr.hbm [resolvable:$true] %s130_s5 }
  0x1b   :  { %s98_s1 = sshll.u32 %s2673_s12, 4  ;;  %s154_s10 = sshll.u32 %s3258_s16, 4  ;;  %s99_s1 = int_to_ptr.vmem [resolvable:$true] %s98_s1  ;;  %s155_s10 = int_to_ptr.hbm [resolvable:$true] %s154_s10 }
  0x1c   :  { %s2674_s0 = smov [#allocation11]   ;;  %s178_s4 = sshll.u32 %s3260_s18, 4  ;;  %s179_s4 = int_to_ptr.hbm [resolvable:$true] %s178_s4 }
  0x1d   :  { %s66_s30 = sshll.u32 %s3286_s9, 4  ;;  %s2676_s8 = smov [#allocation17]   ;;  %s67_s30 = int_to_ptr.hbm [resolvable:$true] %s66_s30 }
  0x1e   :  { %s96_s29 = sshll.u32 %s3287_s11, 4  ;;  %s132_s11 = sshll.u32 %s2674_s0, 4  ;;  %s97_s29 = int_to_ptr.hbm [resolvable:$true] %s96_s29  ;;  %s133_s11 = int_to_ptr.vmem [resolvable:$true] %s132_s11 }
  0x1f   :  { %74 = dma.hbm_to_vmem [thread:$0]  %s67_s30, 256, %s69_s6, [#allocation6], %s2671_s2, %s2671_s2, %s2672_s7  }
  0x20   :  { %104 = dma.hbm_to_vmem [thread:$0]  %s97_s29, 256, %s99_s1, [#allocation9], %s2671_s2, %s2671_s2, %s2672_s7  }
  0x21   :  { %138 = dma.hbm_to_vmem [thread:$0]  %s131_s5, 256, %s133_s11, [#allocation12], %s2671_s2, %s2671_s2, %s2672_s7  }
  0x22   :  { %s2675_s30 = smov [#allocation14]   ;;  %s203_s1 = sshll.u32 %s3262_s20, 4  ;;  %s204_s1 = int_to_ptr.hbm [resolvable:$true] %s203_s1 }
  0x23   :  { %s156_s14 = sshll.u32 %s2675_s30, 4  ;;  %s180_s9 = sshll.u32 %s2676_s8, 4  ;;  %s157_s14 = int_to_ptr.vmem [resolvable:$true] %s156_s14  ;;  %s181_s9 = int_to_ptr.vmem [resolvable:$true] %s180_s9 }
  0x24   :  { %162 = dma.hbm_to_vmem [thread:$0]  %s155_s10, 256, %s157_s14, [#allocation15], %s2671_s2, %s2671_s2, %s2672_s7  }
  0x25   :  { %186 = dma.hbm_to_vmem [thread:$0]  %s179_s4, 256, %s181_s9, [#allocation18], %s2671_s2, %s2671_s2, %s2672_s7  }
  0x26   :  { %s2677_s5 = smov [#allocation20]   ;;  %s224_s11 = sshll.u32 %s3264_s22, 4  ;;  %s225_s11 = int_to_ptr.hbm [resolvable:$true] %s224_s11 }
  0x27   :  { %s205_s18 = sshll.u32 %s2677_s5, 4  ;;  %s3288_s20 = sld [smem:[#allocation41_spill]]  ;;  %s206_s18 = int_to_ptr.vmem [resolvable:$true] %s205_s18 }
  0x28   :  { %208 = dma.hbm_to_vmem [thread:$0]  %s204_s1, 16, %s206_s18, [#allocation21]  }
  0x29   :  { %s2678_s6 = smov [#allocation23]   ;;  %s2679_s4 = smov [#allocation2]  }
  0x2a   :  { %s226_s12 = sshll.u32 %s2678_s6, 4  ;;  %s53_s16 = sshll.u32 %s2679_s4, 4  ;;  %s227_s12 = int_to_ptr.vmem [resolvable:$true] %s226_s12  ;;  %s54_s16 = int_to_ptr.vmem [resolvable:$true] %s53_s16 }
  0x2b   :  { %232 = dma.hbm_to_vmem [thread:$0]  %s225_s11, 256, %s227_s12, [#allocation24], %s2671_s2, %s2671_s2, %s2672_s7  }
  0x2c   :  { %s3289_s22 = sld [smem:[#allocation45_spill]]  ;;  %s2680_s0 = smov [#allocation7]  }
  0x2d   :  { %s51_s14 = sshll.u32 %s3288_s20, 4  ;;  %s3290_s18 = sld [smem:[#allocation51_spill]]  ;;  %s52_s14 = int_to_ptr.hbm [resolvable:$true] %s51_s14 }
  0x2e   :  { %59 = dma.hbm_to_vmem [thread:$0]  %s52_s14, 256, %s54_s16, [#allocation3], %s2671_s2, %s2671_s2, %s2672_s7  }
  0x2f   :  { %s83_s10 = sshll.u32 %s2680_s0, 4  ;;  %s2681_s11 = smov [#allocation10]   ;;  %s84_s10 = int_to_ptr.vmem [resolvable:$true] %s83_s10 }
  0x30   :  { %s117_s30 = sshll.u32 %s2681_s11, 4  ;;  %s144_s12 = sshll.u32 %s3257_s15, 4  ;;  %s118_s30 = int_to_ptr.vmem [resolvable:$true] %s117_s30  ;;  %s145_s12 = int_to_ptr.hbm [resolvable:$true] %s144_s12 }
  0x31   :  { %s168_s16 = sshll.u32 %s3259_s17, 4  ;;  %s2682_s29 = smov [#allocation13]   ;;  %s169_s16 = int_to_ptr.hbm [resolvable:$true] %s168_s16 }
  0x32   :  { %s81_s9 = sshll.u32 %s3289_s22, 4  ;;  %s146_s8 = sshll.u32 %s2682_s29, 4  ;;  %s82_s9 = int_to_ptr.hbm [resolvable:$true] %s81_s9  ;;  %s147_s8 = int_to_ptr.vmem [resolvable:$true] %s146_s8 }
  0x33   :  { %s115_s3 = sshll.u32 %s3290_s18, 4  ;;  %s2683_s22 = smov [#allocation16]   ;;  %s116_s3 = int_to_ptr.hbm [resolvable:$true] %s115_s3 }
  0x34   :  { %89 = dma.hbm_to_vmem [thread:$0]  %s82_s9, 256, %s84_s10, [#allocation6], %s2671_s2, %s2671_s2, %s2672_s7  }
  0x35   :  { %123 = dma.hbm_to_vmem [thread:$0]  %s116_s3, 256, %s118_s30, [#allocation9], %s2671_s2, %s2671_s2, %s2672_s7  }
  0x36   :  { %149 = dma.hbm_to_vmem [thread:$0]  %s145_s12, 16, %s147_s8, [#allocation12]  }
  0x37   :  { %s170_s9 = sshll.u32 %s2683_s22, 4  ;;  %s192_s15 = sshll.u32 %s3261_s19, 4  ;;  %s171_s9 = int_to_ptr.vmem [resolvable:$true] %s170_s9  ;;  %s193_s15 = int_to_ptr.hbm [resolvable:$true] %s192_s15 }
  0x38   :  { %173 = dma.hbm_to_vmem [thread:$0]  %s169_s16, 16, %s171_s9, [#allocation15]  }
  0x39   :  { %s214_s7 = sshll.u32 %s3263_s21, 4  ;;  %s2684_s3 = smov [#allocation19]   ;;  %s215_s7 = int_to_ptr.hbm [resolvable:$true] %s214_s7 }
  0x3a   :  { %s194_s17 = sshll.u32 %s2684_s3, 4  ;;  %s2685_s0 = smov [#allocation22]   ;;  %s195_s17 = int_to_ptr.vmem [resolvable:$true] %s194_s17 }
  0x3b   :  { %197 = dma.hbm_to_vmem [thread:$0]  %s193_s15, 16, %s195_s17, [#allocation18]  }
  0x3c   :  { %s216_s10 = sshll.u32 %s2685_s0, 4  ;;  %s238_s20 = sshll.u32 %s3265_s23, 4  ;;  %s217_s10 = int_to_ptr.vmem [resolvable:$true] %s216_s10  ;;  %s239_s20 = int_to_ptr.hbm [resolvable:$true] %s238_s20 }
  0x3d   :  { %219 = dma.hbm_to_vmem [thread:$0]  %s215_s7, 16, %s217_s10, [#allocation21]  }
  0x3e   :  { %s253_s12 = sshll.u32 %s3268_s26, 4  ;;  %s2686_s14 = smov [#allocation25]   ;;  %s254_s12 = int_to_ptr.hbm [resolvable:$true] %s253_s12 }
  0x3f   :  { %s240_s21 = sshll.u32 %s2686_s14, 4  ;;  %s2687_s4 = smov [#allocation26]   ;;  %s241_s21 = int_to_ptr.vmem [resolvable:$true] %s240_s21 }
  0x40   :  { %243 = dma.hbm_to_vmem [thread:$0]  %s239_s20, 16, %s241_s21, [#allocation24]  }
  0x41   :  { %s255_s16 = sshll.u32 %s2687_s4, 4  ;;  %s256_s16 = int_to_ptr.vmem [resolvable:$true] %s255_s16 }
  0x42   :  { %258 = dma.hbm_to_vmem [thread:$0]  %s254_s12, 16, %s256_s16, [#allocation27]  }
  0x43   :  { %2650 = dma.done.wait [#allocation3], 256  }
  0x44   :  { %2651 = vsyncadd [#allocation3], 4294967040 }
  0x45   :  { %2652 = dma.done.wait [#allocation6], 512  }
  0x46   :  { %2653 = vsyncadd [#allocation6], 4294966784 }
  0x47   :  { %2654 = dma.done.wait [#allocation9], 512  }
  0x48   :  { %2655 = vsyncadd [#allocation9], 4294966784 }
  0x49   :  { %2656 = dma.done.wait [#allocation12], 272  }
  0x4a   :  { %2657 = vsyncadd [#allocation12], 4294967024 }
  0x4b   :  { %2658 = dma.done.wait [#allocation15], 272  }
  0x4c   :  { %2659 = vsyncadd [#allocation15], 4294967024 }
  0x4d   :  { %2660 = dma.done.wait [#allocation18], 272  }
  0x4e   :  { %2661 = vsyncadd [#allocation18], 4294967024 }
  0x4f   :  { %2662 = dma.done.wait [#allocation21], 32  }
  0x50   :  { %2663 = vsyncadd [#allocation21], 4294967264 }
  0x51   :  { %2664 = dma.done.wait [#allocation24], 272  }
  0x52   :  { %2665 = vsyncadd [#allocation24], 4294967024 }
  0x53   :  { %2666 = dma.done.wait [#allocation27], 16  }
  0x54   :  { %2667 = vsyncadd [#allocation27], 4294967280  ;;  %v2065_v0 = vld [vmem:[#allocation2 + $0x8] sm:$0xff]  ;;  %v2067_v1 = vld [vmem:[#allocation5 + $0x8] sm:$0xff]  ;;  %s3291_s29 = sld [smem:[#allocation39_spill]]  ;;  %vm370_vm0 = vcmask 261120   ;;  %v446_v36 = vlaneseq }
  0x55   :  { %v2064_v2 = vld [vmem:[#allocation2] sm:$0xff]  ;;  %v2066_v3 = vld [vmem:[#allocation5] sm:$0xff]  ;;  %380 = vmatpush.bf16.msra.mxu0 %v2065_v0  ;;  %409 = vmatpush.bf16.msra.mxu1 %v2067_v1  ;;  %s3292_s5 = sld [smem:[#allocation42_spill]]  ;;  %vm455_vm1 = vcmask 64512   ;;  %s2688_s7 = smov 112   ;;  %v2069_v29 = vld [vmem:[#allocation7 + $0x8] sm:$0xff] }
  0x56   :  { %s3293_s2 = sld [smem:[#allocation44_spill]]  ;;  %s2689_s3 = smov 120   ;;  %438 = vmatpush.bf16.msra.mxu2 %v2069_v29  ;;  %v2068_v30 = vld [vmem:[#allocation7] sm:$0xff]  ;;  %v447_v39 = vshrl.u32 %v446_v36, 7  ;;  %v449_v40 = vand.u32 127, %v446_v36  ;;  %v2691_v44 = vmov 0.0  }
  0x57   :  { %s2690_s17 = smov 104   ;;  %s3294_s11 = sld [smem:[#allocation46_spill]]  ;;  %vm492_vm3 = vcmask 1043456   ;;  %vm699_vm4 = vcmask 130048   ;;  %vm701_vm5 = vcmask 195584  }
  0x58   :  { %vm450_vm2 = vcmp.gt.s32.totalorder %v449_v40, %v447_v39  ;;  %s2692_s30 = smov 8   ;;  %s2693_s20 = smov 16  }
  0x59   :  { %381 = vmatpush.bf16.msra.mxu0 %v2064_v2  ;;  %410 = vmatpush.bf16.msra.mxu1 %v2066_v3  ;;  %v2964_v45 = vsel %vm450_vm2, -1e+09, %v2691_v44  ;;  %s2694_s19 = smov 24   ;;  %s3295_s14 = sld [smem:[#allocation48_spill]] }
  0x5a   :  { %v2921_v4 = vld [vmem:[%s3291_s29] sm:$0xff]  ;;  %v2926_v5 = vld [vmem:[%s3291_s29 + $0x8] sm:$0xff]  ;;  %439 = vmatpush.bf16.msra.mxu2 %v2068_v30  ;;  %s3296_s16 = sld [smem:[#allocation40_spill]]  ;;  %s2696_s4 = smov [#allocation28]  }
  0x5b   :  { %v354_v6 = vpack.c.bf16 %v2926_v5, %v2921_v4  ;;  %v2144_v7 = vld [vmem:[%s3292_s5] ss:$0 sm:$0xff]  ;;  %s3297_s15 = sld [smem:[#allocation49_spill]]  ;;  %s1911_s29 = sshll.u32 %s3270_s28, 4  ;;  %s1912_s29 = int_to_ptr.hbm [resolvable:$true] %s1911_s29 }
  0x5c   :  { %v2145_v8 = vld [vmem:[%s3293_s2] ss:$0 sm:$0xff]  ;;  %s3298_s0 = sld [smem:[#allocation50_spill]] }
  0x5d   :  { %1940 = vmatmul.msk.bf16.vlgmr.msra.gmra.mxu0 %vm370_vm0, %v354_v6  ;;  %1949 = vmatmul.msk.bf16.vlgmr.msra.gmra.mxu1 %vm370_vm0, %v354_v6  ;;  %v2978_v62 = vld [vmem:[%s3294_s11] ss:$0 sm:$0xff] }
  0x5e   :  { %1958 = vmatmul.msk.bf16.vlgmr.msra.gmra.mxu2 %vm370_vm0, %v354_v6 }
  0xda   :  { %v383_v9 = vpop.f32.mrf.mxu0  ;;  %v412_v10 = vpop.f32.mrf.mxu1 }
  0xdb   :  { %v384_v11 = vadd.f32 %v2144_v7, %v383_v9  ;;  %v413_v12 = vadd.f32 %v2145_v8, %v412_v10 }
  0xdd   :  { %v452_v13 = vpack.c.bf16 %v384_v11, %v384_v11  ;;  %v453_v14 = vpack.c.bf16 %v413_v12, %v413_v12 }
  0xdf   :  { %572 = vrot.lane.b32.xlu1 %v453_v14, %s2688_s7  ;;  %513 = vrot.lane.b32.xlu0 %v453_v14, %s2689_s3  ;;  %v460_v15 = vsel %vm455_vm1, %v453_v14, 0 }
  0xe0   :  { %570 = vrot.lane.b32.xlu2 %v452_v13, %s2688_s7  ;;  %469 = vmatpush.bf16.xpose.msra.mxu3 %v460_v15 }
  0xe1   :  { %v441_v2 = vpop.f32.mrf.mxu2 }
  0xe2   :  { %v385_v16 = vpop.f32.mrf.mxu0  ;;  %v414_v17 = vpop.f32.mrf.mxu1  ;;  %v442_v3 = vadd.f32 %v2978_v62, %v441_v2 }
  0xe3   :  { %v386_v18 = vadd.f32 %v2144_v7, %v385_v16  ;;  %v415_v19 = vadd.f32 %v2145_v8, %v414_v17 }
  0xe4   :  { %v454_v10 = vpack.c.bf16 %v442_v3, %v442_v3 }
  0xe5   :  { %v703_v20 = vpack.c.bf16 %v386_v18, %v386_v18  ;;  %v704_v21 = vpack.c.bf16 %v415_v19, %v415_v19 }
  0xe7   :  { %630 = vrot.lane.b32.xlu1 %v453_v14, %s2690_s17  ;;  %510 = vrot.lane.b32.xlu0 %v452_v13, %s2689_s3  ;;  %v710_v28 = vsel %vm455_vm1, %v704_v21, 0  ;;  %v494_v14 = vsel %vm492_vm3, %v454_v10, 0 }
  0xe8   :  { %628 = vrot.lane.b32.xlu2 %v452_v13, %s2690_s17  ;;  %1959 = vmatmul.msk.bf16.vlgmr.msra.gmra.mxu3 %vm455_vm1, %v452_v13 }
  0xe9   :  { %503 = vmatpush.bf16.msrb.mxu0 %v494_v14 }
  0xef   :  { %759 = vrot.lane.b32.xlu1 %v703_v20, %s2689_s3  ;;  %762 = vrot.lane.b32.xlu0 %v704_v21, %s2689_s3 }
  0xf0   :  { %821 = vrot.lane.b32.xlu2 %v704_v21, %s2688_s7 }
  0xf7   :  { %819 = vrot.lane.b32.xlu1 %v703_v20, %s2688_s7  ;;  %879 = vrot.lane.b32.xlu0 %v704_v21, %s2690_s17 }
  0xf8   :  { %877 = vrot.lane.b32.xlu2 %v703_v20, %s2690_s17 }
 0x13a   :  { %v571_v22 = vpop.permute.xlu2 %570 }
 0x142   :  { %v629_v23 = vpop.permute.xlu2 %628 }
 0x14a   :  { %v822_v31 = vpop.permute.xlu2 %821 }
 0x14b   :  { %v827_v34 = vsel %vm455_vm1, %v822_v31, 0 }
 0x151   :  { %v573_v24 = vpop.permute.xlu1 %572  ;;  %v514_v25 = vpop.permute.xlu0 %513 }
 0x152   :  { %v519_v26 = vsel %vm455_vm1, %v514_v25, 0  ;;  %v578_v27 = vsel %vm455_vm1, %v573_v24, 0  ;;  %v878_v52 = vpop.permute.xlu2 %877 }
 0x153   :  { %528 = vmatpush.bf16.xpose.msrb.mxu1 %v519_v26  ;;  %587 = vmatpush.bf16.xpose.msrb.mxu3 %v578_v27 }
 0x159   :  { %v631_v32 = vpop.permute.xlu1 %630  ;;  %v511_v33 = vpop.permute.xlu0 %510 }
 0x15a   :  { %v636_v35 = vsel %vm455_vm1, %v631_v32, 0  ;;  %1961 = vmatmul.msk.bf16.vlgmr.msrb.gmra.mxu1 %vm455_vm1, %v511_v33  ;;  %1963 = vmatmul.msk.bf16.vlgmr.msrb.gmra.mxu3 %vm455_vm1, %v571_v22 }
 0x15b   :  { %719 = vmatpush.bf16.xpose.msra.mxu3 %v710_v28  ;;  %645 = vmatpush.bf16.xpose.msra.mxu1 %v636_v35 }
 0x161   :  { %v763_v37 = vpop.permute.xlu0 %762  ;;  %v760_v48 = vpop.permute.xlu1 %759 }
 0x162   :  { %v768_v38 = vsel %vm455_vm1, %v763_v37, 0 }
 0x163   :  { %836 = vmatpush.bf16.xpose.msrb.mxu3 %v827_v34  ;;  %777 = vmatpush.bf16.xpose.msrb.mxu1 %v768_v38 }
 0x169   :  { %v880_v41 = vpop.permute.xlu0 %879  ;;  %v820_v51 = vpop.permute.xlu1 %819 }
 0x16a   :  { %v885_v42 = vsel %vm455_vm1, %v880_v41, 0  ;;  %1965 = vmatmul.msk.bf16.vlgmr.msra.gmra.mxu1 %vm455_vm1, %v629_v23  ;;  %1967 = vmatmul.msk.bf16.vlgmr.msra.gmra.mxu3 %vm455_vm1, %v703_v20 }
 0x16b   :  { %v471_v43 = vpop.f32.mrf.mxu3  ;;  %894 = vmatpush.bf16.xpose.msra.mxu1 %v885_v42 }
 0x16c   :  { %v475_v46 = vmul.f32 0.35355338, %v471_v43 }
 0x16e   :  { %v476_v47 = vadd.f32 %v475_v46, %v2964_v45 }
 0x170   :  { %v477_v49 = vsel %vm455_vm1, %v476_v47, -inf }
 0x171   :  { %478 = vmax.xlane.f32.xlu1 %v477_v49 }
 0x173   :  { %v473_v50 = vpop.f32.mrf.mxu3 }
 0x17a   :  { %1969 = vmatmul.msk.bf16.vlgmr.msrb.gmra.mxu1 %vm455_vm1, %v760_v48  ;;  %1971 = vmatmul.msk.bf16.vlgmr.msrb.gmra.mxu3 %vm455_vm1, %v820_v51 }
 0x18a   :  { %1973 = vmatmul.msk.bf16.vlgmr.msra.gmra.mxu1 %vm455_vm1, %v878_v52  ;;  %v443_v52 = vpop.f32.mrf.mxu2 }
 0x1d7   :  { %v530_v53 = vpop.f32.mrf.mxu1 }
 0x1d8   :  { %v534_v54 = vmul.f32 0.35355338, %v530_v53 }
 0x1da   :  { %v535_v55 = vadd.f32 %v534_v54, %v2964_v45 }
 0x1dc   :  { %v536_v56 = vsel %vm455_vm1, %v535_v55, -inf }
 0x1dd   :  { %537 = vmax.xlane.f32.xlu0 %v536_v56  ;;  %v589_v57 = vpop.f32.mrf.mxu3 }
 0x1de   :  { %v593_v58 = vmul.f32 0.35355338, %v589_v57 }
 0x1df   :  { %v532_v59 = vpop.f32.mrf.mxu1 }
 0x1e0   :  { %v594_v60 = vadd.f32 %v593_v58, %v2964_v45 }
 0x1e2   :  { %v595_v61 = vsel %vm455_vm1, %v594_v60, -inf }
 0x1e3   :  { %596 = vmax.xlane.f32.xlu2 %v595_v61 }
 0x1e4   :  { %v479_v63 = vpop.xlane.xlu1 %478 }
 0x1e5   :  { %v480_v0 = vsub.f32 %v476_v47, %v479_v63  ;;  %v591_v1 = vpop.f32.mrf.mxu3 }
 0x1e7   :  { %v481_v6 = vmul.f32 1.442695, %v480_v0  ;;  %v647_v7 = vpop.f32.mrf.mxu1 }
 0x1e8   :  { %v651_v8 = vmul.f32 0.35355338, %v647_v7 }
 0x1e9   :  { %2160 = vpow2.f32 %v481_v6 }
 0x1ea   :  { %v652_v9 = vadd.f32 %v651_v8, %v2964_v45 }
 0x1ec   :  { %v653_v11 = vsel %vm455_vm1, %v652_v9, -inf }
 0x1ed   :  { %654 = vmax.xlane.f32.xlu2 %v653_v11  ;;  %v721_v12 = vpop.f32.mrf.mxu3 }
 0x1ee   :  { %v725_v13 = vmul.f32 0.35355338, %v721_v12 }
 0x1ef   :  { %v649_v15 = vpop.f32.mrf.mxu1  ;;  %v2161_v17 = vpop.eup %2160 }
 0x1f0   :  { %v726_v16 = vadd.f32 %v725_v13, %v2964_v45  ;;  %v483_v19 = vsel %vm455_vm1, %v2161_v17, 0.0 }
 0x1f2   :  { %v727_v18 = vsel %vm455_vm1, %v726_v16, -inf }
 0x1f3   :  { %728 = vmax.xlane.f32.xlu1 %v727_v18 }
 0x1f5   :  { %484 = vadd.xlane.f32.xlu2 %v483_v19  ;;  %v723_v20 = vpop.f32.mrf.mxu3 }
 0x1f7   :  { %v779_v21 = vpop.f32.mrf.mxu1 }
 0x1f8   :  { %v783_v22 = vmul.f32 0.35355338, %v779_v21 }
 0x1fa   :  { %v784_v23 = vadd.f32 %v783_v22, %v2964_v45 }
 0x1fc   :  { %v785_v24 = vsel %vm455_vm1, %v784_v23, -inf }
 0x1fd   :  { %786 = vmax.xlane.f32.xlu0 %v785_v24  ;;  %v838_v25 = vpop.f32.mrf.mxu3 }
 0x1fe   :  { %v842_v26 = vmul.f32 0.35355338, %v838_v25 }
 0x1ff   :  { %v781_v27 = vpop.f32.mrf.mxu1 }
 0x200   :  { %v843_v28 = vadd.f32 %v842_v26, %v2964_v45 }
 0x202   :  { %v844_v29 = vsel %vm455_vm1, %v843_v28, -inf }
 0x203   :  { %845 = vmax.xlane.f32.xlu1 %v844_v29 }
 0x205   :  { %v840_v30 = vpop.f32.mrf.mxu3 }
 0x207   :  { %v896_v31 = vpop.f32.mrf.mxu1 }
 0x208   :  { %v900_v33 = vmul.f32 0.35355338, %v896_v31 }
 0x20a   :  { %v2995_v34 = vadd.f32 %v900_v33, %v2964_v45 }
 0x20c   :  { %v902_v35 = vsel %vm455_vm1, %v2995_v34, -inf }
 0x20d   :  { %607 = vrot.lane.b32.xlu2 %v454_v10, %s2688_s7 }
 0x20f   :  { %v898_v32 = vpop.f32.mrf.mxu1 }
 0x211   :  { %549 = vrot.lane.b32.xlu0 %v454_v10, %s2689_s3 }
 0x21c   :  { %665 = vrot.lane.b32.xlu1 %v454_v10, %s2690_s17 }
 0x236   :  { %903 = vmax.xlane.f32.xlu2 %v902_v35 }
 0x250   :  { %v538_v36 = vpop.xlane.xlu0 %537 }
 0x251   :  { %v539_v37 = vsub.f32 %v535_v55, %v538_v36  ;;  %v444_v55 = vadd.f32 %v2978_v62, %v443_v52 }
 0x253   :  { %v540_v38 = vmul.f32 1.442695, %v539_v37  ;;  %v705_v58 = vpack.c.bf16 %v444_v55, %v444_v55 }
 0x255   :  { %2162 = vpow2.f32 %v540_v38  ;;  %v743_v62 = vsel %vm492_vm3, %v705_v58, 0 }
 0x256   :  { %v597_v39 = vpop.xlane.xlu2 %596 }
 0x257   :  { %v598_v40 = vsub.f32 %v594_v60, %v597_v39 }
 0x259   :  { %v599_v41 = vmul.f32 1.442695, %v598_v40 }
 0x25b   :  { %v2999_v42 = vpop.eup %2162  ;;  %2164 = vpow2.f32 %v599_v41 }
 0x25c   :  { %v542_v43 = vsel %vm455_vm1, %v2999_v42, 0.0 }
 0x25d   :  { %543 = vadd.xlane.f32.xlu0 %v542_v43 }
 0x260   :  { %v655_v44 = vpop.xlane.xlu2 %654 }
 0x261   :  { %v3003_v45 = vpop.eup %2164  ;;  %v656_v46 = vsub.f32 %v652_v9, %v655_v44 }
 0x262   :  { %v601_v47 = vsel %vm455_vm1, %v3003_v45, 0.0 }
 0x263   :  { %v657_v48 = vmul.f32 1.442695, %v656_v46  ;;  %602 = vadd.xlane.f32.xlu2 %v601_v47 }
 0x265   :  { %2166 = vpow2.f32 %v657_v48 }
 0x266   :  { %v729_v49 = vpop.xlane.xlu1 %728 }
 0x267   :  { %v730_v50 = vsub.f32 %v726_v16, %v729_v49 }
 0x268   :  { %v485_v51 = vpop.xlane.xlu2 %484 }
 0x269   :  { %v731_v53 = vmul.f32 1.442695, %v730_v50  ;;  %2168 = vrcp.f32 %v485_v51 }
 0x26b   :  { %v3007_v54 = vpop.eup %2166  ;;  %2170 = vpow2.f32 %v731_v53 }
 0x26c   :  { %v659_v56 = vsel %vm455_vm1, %v3007_v54, 0.0 }
 0x26d   :  { %660 = vadd.xlane.f32.xlu1 %v659_v56 }
 0x26f   :  { %v2169_v57 = vpop.eup %2168 }
 0x270   :  { %v487_v59 = vmul.f32 %v2169_v57, %v2161_v17  ;;  %v787_v60 = vpop.xlane.xlu0 %786  ;;  %v608_v61 = vpop.permute.xlu2 %607 }
 0x271   :  { %v2171_v63 = vpop.eup %2170  ;;  %v788_v0 = vsub.f32 %v784_v23, %v787_v60  ;;  %v613_v1 = vsel %vm492_vm3, %v608_v61, 0 }
 0x272   :  { %622 = vmatpush.bf16.msra.mxu0 %v613_v1  ;;  %v488_v2 = vpack.c.bf16 %v487_v59, %v487_v59  ;;  %v733_v6 = vsel %vm455_vm1, %v2171_v63, 0.0 }
 0x273   :  { %v789_v3 = vmul.f32 1.442695, %v788_v0 }
 0x274   :  { %1960 = vmatmul.msk.bf16.vlgmr.msrb.gmra.mxu0 %vm455_vm1, %v488_v2 }
 0x275   :  { %2172 = vpow2.f32 %v789_v3  ;;  %734 = vadd.xlane.f32.xlu1 %v733_v6 }
 0x276   :  { %752 = vmatpush.bf16.msrb.mxu0 %v743_v62  ;;  %v846_v7 = vpop.xlane.xlu1 %845 }
 0x277   :  { %v847_v8 = vsub.f32 %v843_v28, %v846_v7 }
 0x279   :  { %v848_v9 = vmul.f32 1.442695, %v847_v8 }
 0x27b   :  { %v2173_v10 = vpop.eup %2172  ;;  %2174 = vpow2.f32 %v848_v9  ;;  %798 = vrot.lane.b32.xlu2 %v705_v58, %s2689_s3 }
 0x27c   :  { %v791_v11 = vsel %vm455_vm1, %v2173_v10, 0.0 }
 0x27d   :  { %792 = vadd.xlane.f32.xlu0 %v791_v11 }
 0x281   :  { %v2175_v12 = vpop.eup %2174 }
 0x282   :  { %v850_v15 = vsel %vm455_vm1, %v2175_v12, 0.0 }
 0x283   :  { %v550_v13 = vpop.permute.xlu0 %549 }
 0x284   :  { %v555_v14 = vsel %vm492_vm3, %v550_v13, 0 }
 0x285   :  { %564 = vmatpush.bf16.msrb.mxu2 %v555_v14  ;;  %851 = vadd.xlane.f32.xlu0 %v850_v15  ;;  %v2071_v14 = vld [vmem:[#allocation8 + $0x8] sm:$0xff]  ;;  %v2070_v15 = vld [vmem:[#allocation8] sm:$0xff] }
 0x286   :  { %975 = vmatpush.bf16.msra.mxu3 %v2071_v14 }
 0x28a   :  { %976 = vmatpush.bf16.msra.mxu3 %v2070_v15 }
 0x28e   :  { %856 = vrot.lane.b32.xlu1 %v705_v58, %s2688_s7  ;;  %v666_v16 = vpop.permute.xlu1 %665 }
 0x28f   :  { %v671_v17 = vsel %vm492_vm3, %v666_v16, 0 }
 0x290   :  { %680 = vmatpush.bf16.msra.mxu2 %v671_v17 }
 0x299   :  { %914 = vrot.lane.b32.xlu0 %v705_v58, %s2690_s17 }
 0x2a9   :  { %v904_v18 = vpop.xlane.xlu2 %903 }
 0x2aa   :  { %v905_v19 = vsub.f32 %v2995_v34, %v904_v18 }
 0x2ac   :  { %v906_v20 = vmul.f32 1.442695, %v905_v19 }
 0x2ae   :  { %2176 = vpow2.f32 %v906_v20 }
 0x2b4   :  { %v2177_v21 = vpop.eup %2176 }
 0x2b5   :  { %v908_v22 = vsel %vm455_vm1, %v2177_v21, 0.0 }
 0x2b6   :  { %909 = vadd.xlane.f32.xlu2 %v908_v22 }
 0x2d0   :  { %v544_v23 = vpop.xlane.xlu0 %543 }
 0x2d1   :  { %2178 = vrcp.f32 %v544_v23 }
 0x2d6   :  { %v603_v24 = vpop.xlane.xlu2 %602 }
 0x2d7   :  { %v2179_v25 = vpop.eup %2178  ;;  %2180 = vrcp.f32 %v603_v24 }
 0x2d8   :  { %v546_v26 = vmul.f32 %v2179_v25, %v2999_v42 }
 0x2da   :  { %v547_v27 = vpack.c.bf16 %v546_v26, %v546_v26 }
 0x2dc   :  { %1962 = vmatmul.msk.bf16.vlgmr.msrb.gmra.mxu2 %vm455_vm1, %v547_v27 }
 0x2dd   :  { %v2181_v28 = vpop.eup %2180 }
 0x2de   :  { %v605_v29 = vmul.f32 %v2181_v28, %v3003_v45  ;;  %v799_v30 = vpop.permute.xlu2 %798 }
 0x2df   :  { %v804_v31 = vsel %vm492_vm3, %v799_v30, 0 }
 0x2e0   :  { %v606_v32 = vpack.c.bf16 %v605_v29, %v605_v29  ;;  %813 = vmatpush.bf16.msrb.mxu2 %v804_v31  ;;  %v661_v33 = vpop.xlane.xlu1 %660 }
 0x2e1   :  { %2182 = vrcp.f32 %v661_v33 }
 0x2e2   :  { %1964 = vmatmul.msk.bf16.vlgmr.msra.gmra.mxu0 %vm455_vm1, %v606_v32  ;;  %v2147_v32 = vld [vmem:[%s3295_s14] ss:$0 sm:$0xff] }
 0x2e7   :  { %v2183_v34 = vpop.eup %2182 }
 0x2e8   :  { %v663_v35 = vmul.f32 %v2183_v34, %v3007_v54  ;;  %v735_v36 = vpop.xlane.xlu1 %734 }
 0x2e9   :  { %2184 = vrcp.f32 %v735_v36 }
 0x2ea   :  { %v664_v37 = vpack.c.bf16 %v663_v35, %v663_v35 }
 0x2ec   :  { %1966 = vmatmul.msk.bf16.vlgmr.msra.gmra.mxu2 %vm455_vm1, %v664_v37 }
 0x2ef   :  { %v2185_v38 = vpop.eup %2184 }
 0x2f0   :  { %v737_v39 = vmul.f32 %v2185_v38, %v2171_v63  ;;  %v793_v40 = vpop.xlane.xlu0 %792 }
 0x2f1   :  { %2186 = vrcp.f32 %v793_v40  ;;  %v3032_v41 = vpop.f32.mrf.mxu0 }
 0x2f2   :  { %v738_v42 = vpack.c.bf16 %v737_v39, %v737_v39 }
 0x2f4   :  { %1968 = vmatmul.msk.bf16.vlgmr.msrb.gmra.mxu0 %vm455_vm1, %v738_v42 }
 0x2f7   :  { %v2187_v43 = vpop.eup %2186 }
 0x2f8   :  { %v795_v44 = vmul.f32 %v2187_v43, %v2173_v10  ;;  %v852_v45 = vpop.xlane.xlu0 %851 }
 0x2f9   :  { %2188 = vrcp.f32 %v852_v45  ;;  %v507_v46 = vpop.f32.mrf.mxu0 }
 0x2fa   :  { %v796_v47 = vpack.c.bf16 %v795_v44, %v795_v44  ;;  %v2075_v44 = vld [vmem:[#allocation11 + $0x8] sm:$0xff]  ;;  %v2074_v46 = vld [vmem:[#allocation11] sm:$0xff] }
 0x2fb   :  { %1130 = vmatpush.bf16.msrb.mxu1 %v2075_v44 }
 0x2fc   :  { %1970 = vmatmul.msk.bf16.vlgmr.msrb.gmra.mxu2 %vm455_vm1, %v796_v47  ;;  %v329_v47 = vld [vmem:[%s3296_s16 + $0x8] sm:$0xff] }
 0x2ff   :  { %v2189_v48 = vpop.eup %2188  ;;  %1131 = vmatpush.bf16.msrb.mxu1 %v2074_v46 }
 0x300   :  { %v854_v49 = vmul.f32 %v2189_v48, %v2175_v12  ;;  %v857_v50 = vpop.permute.xlu1 %856 }
 0x301   :  { %v862_v51 = vsel %vm492_vm3, %v857_v50, 0 }
 0x302   :  { %v855_v52 = vpack.c.bf16 %v854_v49, %v854_v49  ;;  %871 = vmatpush.bf16.msra.mxu0 %v862_v51 }
 0x305   :  { %1972 = vmatmul.msk.bf16.vlgmr.msra.gmra.mxu0 %vm455_vm1, %v855_v52 }
 0x30b   :  { %v915_v53 = vpop.permute.xlu0 %914 }
 0x30c   :  { %v920_v54 = vsel %vm492_vm3, %v915_v53, 0 }
 0x30d   :  { %929 = vmatpush.bf16.msra.mxu2 %v920_v54 }
 0x329   :  { %v910_v55 = vpop.xlane.xlu2 %909 }
 0x32a   :  { %2190 = vrcp.f32 %v910_v55 }
 0x330   :  { %v2191_v56 = vpop.eup %2190 }
 0x331   :  { %v912_v57 = vmul.f32 %v2191_v56, %v2177_v21 }
 0x333   :  { %v913_v58 = vpack.c.bf16 %v912_v57, %v912_v57 }
 0x335   :  { %1974 = vmatmul.msk.bf16.vlgmr.msra.gmra.mxu2 %vm455_vm1, %v913_v58 }
 0x35f   :  { %v566_v59 = vpop.f32.mrf.mxu2  ;;  %v624_v60 = vpop.f32.mrf.mxu0 }
 0x367   :  { %v568_v61 = vpop.f32.mrf.mxu2  ;;  %v626_v63 = vpop.f32.mrf.mxu0 }
 0x368   :  { %v2073_v61 = vld [vmem:[#allocation10 + $0x8] sm:$0xff] }
 0x369   :  { %1093 = vmatpush.bf16.msrb.mxu0 %v2073_v61 }
 0x36f   :  { %v682_v0 = vpop.f32.mrf.mxu2 }
 0x371   :  { %v754_v1 = vpop.f32.mrf.mxu0 }
 0x377   :  { %v684_v2 = vpop.f32.mrf.mxu2 }
 0x378   :  { %v2072_v2 = vld [vmem:[#allocation10] sm:$0xff] }
 0x379   :  { %v756_v3 = vpop.f32.mrf.mxu0  ;;  %1094 = vmatpush.bf16.msrb.mxu0 %v2072_v2 }
 0x37a   :  { %v330_v3 = vld [vmem:[%s3296_s16 + $0x10] sm:$0xff] }
 0x37f   :  { %v815_v62 = vpop.f32.mrf.mxu2 }
 0x380   :  { %v2114_v6 = vpack.i.bf16 %v815_v62, %v566_v59  ;;  %v331_v62 = vld [vmem:[%s3296_s16 + $0x18] sm:$0xff] }
 0x382   :  { %2115 = vrot.lane.b32.xlu2 %v2114_v6, %s2692_s30  ;;  %v873_v7 = vpop.f32.mrf.mxu0  ;;  %v3081_v6 = vpack.c.bf16 %v331_v62, %v330_v3 }
 0x383   :  { %v2119_v8 = vpack.i.bf16 %v873_v7, %v624_v60 }
 0x385   :  { %2120 = vrot.lane.b32.xlu0 %v2119_v8, %s2693_s20 }
 0x387   :  { %v817_v9 = vpop.f32.mrf.mxu2 }
 0x38a   :  { %v875_v10 = vpop.f32.mrf.mxu0 }
 0x38b   :  { %v2150_v10 = vld [vmem:[#allocation13] ss:$0 sm:$0xff] }
 0x3b8   :  { %v931_v11 = vpop.f32.mrf.mxu2 }
 0x3b9   :  { %v2124_v12 = vpack.i.bf16 %v931_v11, %v682_v0 }
 0x3bb   :  { %2125 = vrot.lane.b32.xlu0 %v2124_v12, %s2694_s19 }
 0x3c0   :  { %v933_v13 = vpop.f32.mrf.mxu2 }
 0x3dc   :  { %v2116_v17 = vpop.permute.xlu2 %2115 }
 0x3dd   :  { %v2118_v18 = vunpack.i.h.bf16 %v2116_v17  ;;  %v2117_v19 = vunpack.i.l.bf16 %v2116_v17 }
 0x3df   :  { %v698_v23 = vsel %vm455_vm1, %v3032_v41, %v2117_v19  ;;  %v947_v24 = vsel %vm455_vm1, %v754_v1, %v2118_v18  ;;  %v2695_v41 = vmov 32.0  }
 0x3e0   :  { %2192 = vrcp.f32 %v2695_v41 }
 0x3e6   :  { %v2193_v42 = vpop.eup %2192 }
 0x3e7   :  { %v992_v43 = vmul.f32 32.0, %v2193_v42  ;;  %vm996_vm6 = vweird.f32 %v2193_v42 }
 0x3e9   :  { %v993_v45 = vsub.f32 1.0, %v992_v43 }
 0x3eb   :  { %v994_v48 = vmul.f32 %v2193_v42, %v993_v45  ;;  %v2151_v45 = vld [vmem:[%s3255_s13] ss:$0 sm:$0xff] }
 0x3ed   :  { %v995_v49 = vadd.f32 %v2193_v42, %v994_v48 }
 0x3ef   :  { %v3068_v50 = vsel %vm996_vm6, %v2193_v42, %v995_v49 }
 0x3f7   :  { %v2121_v16 = vpop.permute.xlu0 %2120 }
 0x3f8   :  { %v2123_v20 = vunpack.i.h.bf16 %v2121_v16  ;;  %v2122_v21 = vunpack.i.l.bf16 %v2121_v16 }
 0x3fa   :  { %v948_v27 = vsel %vm699_vm4, %v947_v24, %v2123_v20  ;;  %v700_v28 = vsel %vm699_vm4, %v698_v23, %v2122_v21 }
 0x42d   :  { %v2126_v22 = vpop.permute.xlu0 %2125 }
 0x42e   :  { %v2128_v25 = vunpack.i.h.bf16 %v2126_v22  ;;  %v2127_v26 = vunpack.i.l.bf16 %v2126_v22 }
 0x430   :  { %v702_v29 = vsel %vm701_vm5, %v700_v28, %v2127_v26  ;;  %v949_v30 = vsel %vm701_vm5, %v948_v27, %v2128_v25 }
 0x431   :  { %v950_v31 = vpack.c.bf16 %v949_v30, %v702_v29  ;;  %v2148_v29 = vld [vmem:[%s3297_s15] ss:$0 sm:$0xff] }
 0x433   :  { %1983 = vmatmul.msk.bf16.vlgmr.msra.gmra.mxu3 %vm370_vm0, %v950_v31 }
 0x4b6   :  { %v978_v33 = vpop.f32.mrf.mxu3 }
 0x4b7   :  { %v979_v34 = vadd.f32 %v2147_v32, %v978_v33  ;;  %v2149_v33 = vld [vmem:[%s3298_s0] ss:$0 sm:$0xff] }
 0x4b9   :  { %v983_v35 = vadd.f32 %v979_v34, %v2921_v4  ;;  %v328_v4 = vld [vmem:[%s3296_s16] sm:$0xff]  ;;  %s1909_s16 = sshll.u32 %s2696_s4, 4  ;;  %s1910_s16 = int_to_ptr.vmem [resolvable:$true] %s1909_s16 }
 0x4bb   :  { %v985_v36 = vsel %vm370_vm0, %v983_v35, 0.0 }
 0x4bc   :  { %986 = vadd.xlane.f32.xlu1 %v985_v36 }
 0x4be   :  { %v980_v37 = vpop.f32.mrf.mxu3 }
 0x4bf   :  { %v981_v38 = vadd.f32 %v2147_v32, %v980_v37 }
 0x4c1   :  { %v984_v39 = vadd.f32 %v981_v38, %v2926_v5  ;;  %v3064_v5 = vpack.c.bf16 %v329_v47, %v328_v4 }
 0x4c3   :  { %v988_v40 = vsel %vm370_vm0, %v984_v39, 0.0  ;;  %2001 = vmatmul.msk.bf16.vlgmr.msrb.gmra.mxu1 %vm370_vm0, %v3064_v5 }
 0x4c4   :  { %989 = vadd.xlane.f32.xlu0 %v988_v40 }
 0x4d3   :  { %2002 = vmatmul.msk.bf16.gmra.mxu1 %vm370_vm0, %v3081_v6 }
 0x52f   :  { %v987_v51 = vpop.xlane.xlu1 %986 }
 0x530   :  { %v998_v52 = vmul.f32 %v3068_v50, %v987_v51 }
 0x532   :  { %v1000_v53 = vsub.f32 %v983_v35, %v998_v52 }
 0x534   :  { %v1002_v54 = vmul.f32 %v1000_v53, %v1000_v53 }
 0x536   :  { %v1004_v55 = vsel %vm370_vm0, %v1002_v54, 0.0 }
 0x537   :  { %v990_v56 = vpop.xlane.xlu0 %989  ;;  %1005 = vadd.xlane.f32.xlu2 %v1004_v55 }
 0x538   :  { %v999_v57 = vmul.f32 %v3068_v50, %v990_v56 }
 0x53a   :  { %v1001_v58 = vsub.f32 %v984_v39, %v999_v57 }
 0x53c   :  { %v1003_v59 = vmul.f32 %v1001_v58, %v1001_v58 }
 0x53e   :  { %v1007_v60 = vsel %vm370_vm0, %v1003_v59, 0.0  ;;  %v2077_v59 = vld [vmem:[#allocation14 + $0x8] sm:$0xff] }
 0x53f   :  { %1008 = vadd.xlane.f32.xlu1 %v1007_v60  ;;  %1164 = vmatpush.bf16.msrb.mxu2 %v2077_v59  ;;  %v2076_v60 = vld [vmem:[#allocation14] sm:$0xff] }
 0x540   :  { %v1133_v7 = vpop.f32.mrf.mxu1 }
 0x541   :  { %v1134_v15 = vadd.f32 %v2150_v10, %v1133_v7 }
 0x543   :  { %1165 = vmatpush.bf16.msrb.mxu2 %v2076_v60 }
 0x546   :  { %2011 = vmatmul.msk.bf16.vlgmr.msrb.gmra.mxu2 %vm370_vm0, %v3064_v5 }
 0x548   :  { %v1135_v16 = vpop.f32.mrf.mxu1 }
 0x549   :  { %v1136_v18 = vadd.f32 %v2150_v10, %v1135_v16 }
 0x54b   :  { %v1178_v20 = vpack.c.bf16 %v1136_v18, %v1134_v15 }
 0x54d   :  { %1232 = vrot.lane.b32.xlu0 %v1178_v20, %s2689_s3  ;;  %v1184_v24 = vsel %vm455_vm1, %v1178_v20, 0 }
 0x54e   :  { %1193 = vmatpush.bf16.xpose.msrb.mxu3 %v1184_v24 }
 0x54f   :  { %1288 = vrot.lane.b32.xlu2 %v1178_v20, %s2688_s7 }
 0x550   :  { %v1138_v40 = vpop.f32.mrf.mxu1 }
 0x551   :  { %v1139_v41 = vadd.f32 %v2150_v10, %v1138_v40 }
 0x555   :  { %1343 = vrot.lane.b32.xlu0 %v1178_v20, %s2690_s17 }
 0x556   :  { %2012 = vmatmul.msk.bf16.gmra.mxu2 %vm370_vm0, %v3081_v6 }
 0x558   :  { %v1140_v42 = vpop.f32.mrf.mxu1 }
 0x559   :  { %v1141_v43 = vadd.f32 %v2150_v10, %v1140_v42 }
 0x55b   :  { %v1412_v44 = vpack.c.bf16 %v1141_v43, %v1139_v41 }
 0x55d   :  { %1466 = vrot.lane.b32.xlu2 %v1412_v44, %s2689_s3  ;;  %v1418_v4 = vsel %vm455_vm1, %v1412_v44, 0 }
 0x565   :  { %1577 = vrot.lane.b32.xlu2 %v1412_v44, %s2690_s17 }
 0x5aa   :  { %v1006_v63 = vpop.xlane.xlu2 %1005 }
 0x5ab   :  { %v1010_v0 = vmul.f32 %v1006_v63, %v3068_v50 }
 0x5ad   :  { %v1012_v1 = vadd.f32 1e-05, %v1010_v0 }
 0x5af   :  { %2194 = vrsqrt.f32 %v1012_v1  ;;  %vm1020_vm8 = vweird.f32 %v1012_v1 }
 0x5b2   :  { %v1009_v8 = vpop.xlane.xlu1 %1008  ;;  %v1289_v46 = vpop.permute.xlu2 %1288 }
 0x5b3   :  { %v1011_v9 = vmul.f32 %v1009_v8, %v3068_v50  ;;  %v1294_v48 = vsel %vm455_vm1, %v1289_v46, 0 }
 0x5b4   :  { %1303 = vmatpush.bf16.xpose.msra.mxu1 %v1294_v48 }
 0x5b5   :  { %v2195_v11 = vpop.eup %2194  ;;  %v1013_v12 = vadd.f32 1e-05, %v1011_v9 }
 0x5b6   :  { %v1015_v13 = vmul.f32 %v2195_v11, %v1012_v1  ;;  %vm1021_vm7 = vweird.f32 %v2195_v11 }
 0x5b7   :  { %2196 = vrsqrt.f32 %v1013_v12  ;;  %vm1022_vm9 = vmor %vm1020_vm8, %vm1021_vm7  ;;  %vm1030_vm11 = vweird.f32 %v1013_v12 }
 0x5b8   :  { %v1016_v14 = vmul.f32 %v2195_v11, %v1015_v13 }
 0x5ba   :  { %v1017_v17 = vmul.f32 0.5, %v1016_v14  ;;  %v1467_v61 = vpop.permute.xlu2 %1466 }
 0x5bb   :  { %v1472_v63 = vsel %vm455_vm1, %v1467_v61, 0 }
 0x5bc   :  { %v1018_v19 = vsub.f32 1.5, %v1017_v17  ;;  %1427 = vmatpush.bf16.xpose.msrb.mxu1 %v1418_v4 }
 0x5bd   :  { %v2197_v21 = vpop.eup %2196 }
 0x5be   :  { %v1019_v22 = vmul.f32 %v2195_v11, %v1018_v19  ;;  %v1025_v23 = vmul.f32 %v2197_v21, %v1013_v12  ;;  %vm1031_vm10 = vweird.f32 %v2197_v21 }
 0x5bf   :  { %vm1032_vm12 = vmor %vm1030_vm11, %vm1031_vm10  ;;  %v1233_v47 = vpop.permute.xlu0 %1232 }
 0x5c0   :  { %v1026_v25 = vmul.f32 %v2197_v21, %v1025_v23  ;;  %v1023_v26 = vsel %vm1022_vm9, %v2195_v11, %v1019_v22  ;;  %v1238_v49 = vsel %vm455_vm1, %v1233_v47, 0  ;;  %v3137_v23 = vld [vmem:[#allocation16] ss:$0 sm:$0xff] }
 0x5c1   :  { %v1034_v30 = vmul.f32 %v1023_v26, %v1000_v53  ;;  %1247 = vmatpush.bf16.xpose.msra.mxu3 %v1238_v49 }
 0x5c2   :  { %v1027_v27 = vmul.f32 0.5, %v1026_v25  ;;  %v1578_v7 = vpop.permute.xlu2 %1577 }
 0x5c3   :  { %v1039_v34 = vmul.f32 %v2148_v29, %v1034_v30  ;;  %v1583_v8 = vsel %vm455_vm1, %v1578_v7, 0 }
 0x5c4   :  { %v1028_v28 = vsub.f32 1.5, %v1027_v27 }
 0x5c5   :  { %v3096_v37 = vadd.f32 %v2149_v33, %v1039_v34 }
 0x5c6   :  { %v1029_v31 = vmul.f32 %v2197_v21, %v1028_v28 }
 0x5c7   :  { %v1344_v54 = vpop.permute.xlu0 %1343 }
 0x5c8   :  { %v1033_v32 = vsel %vm1032_vm12, %v2197_v21, %v1029_v31  ;;  %v1349_v55 = vsel %vm455_vm1, %v1344_v54, 0 }
 0x5c9   :  { %v1035_v35 = vmul.f32 %v1033_v32, %v1001_v58  ;;  %v1167_v19 = vpop.f32.mrf.mxu2 }
 0x5ca   :  { %v1168_v27 = vadd.f32 %v3137_v23, %v1167_v19 }
 0x5cb   :  { %v1040_v36 = vmul.f32 %v2148_v29, %v1035_v35 }
 0x5cd   :  { %v3098_v38 = vadd.f32 %v2149_v33, %v1040_v36 }
 0x5cf   :  { %v1068_v39 = vpack.c.bf16 %v3098_v38, %v3096_v37 }
 0x5d1   :  { %1992 = vmatmul.msk.bf16.vlgmr.msrb.gmra.mxu0 %vm370_vm0, %v1068_v39  ;;  %v1169_v28 = vpop.f32.mrf.mxu2 }
 0x5d2   :  { %v1170_v29 = vadd.f32 %v3137_v23, %v1169_v28 }
 0x5d4   :  { %v1179_v30 = vpack.c.bf16 %v1170_v29, %v1168_v27 }
 0x5d6   :  { %1222 = vmatpush.bf16.msra.mxu0 %v1179_v30 }
 0x64e   :  { %v1096_v51 = vpop.f32.mrf.mxu0 }
 0x64f   :  { %v1097_v52 = vadd.f32 %v2151_v45, %v1096_v51 }
 0x651   :  { %v1177_v53 = vpack.c.bf16 %v1097_v52, %v1097_v52 }
 0x653   :  { %1341 = vrot.lane.b32.xlu0 %v1177_v53, %s2690_s17  ;;  %1229 = vrot.lane.b32.xlu1 %v1177_v53, %s2689_s3 }
 0x654   :  { %2013 = vmatmul.msk.bf16.vlgmr.msrb.gmra.mxu3 %vm455_vm1, %v1177_v53 }
 0x655   :  { %1358 = vmatpush.bf16.xpose.msrb.mxu3 %v1349_v55 }
 0x656   :  { %v1098_v56 = vpop.f32.mrf.mxu0 }
 0x657   :  { %v1099_v57 = vadd.f32 %v2151_v45, %v1098_v56 }
 0x659   :  { %v1411_v58 = vpack.c.bf16 %v1099_v57, %v1099_v57 }
 0x65b   :  { %1522 = vrot.lane.b32.xlu0 %v1412_v44, %s2688_s7  ;;  %1286 = vrot.lane.b32.xlu1 %v1177_v53, %s2688_s7 }
 0x663   :  { %1575 = vrot.lane.b32.xlu0 %v1411_v58, %s2690_s17  ;;  %1463 = vrot.lane.b32.xlu1 %v1411_v58, %s2689_s3 }
 0x66b   :  { %1520 = vrot.lane.b32.xlu1 %v1411_v58, %s2688_s7 }
 0x6c5   :  { %v1342_v0 = vpop.permute.xlu0 %1341  ;;  %v1230_v1 = vpop.permute.xlu1 %1229 }
 0x6c6   :  { %2015 = vmatmul.msk.bf16.vlgmr.msra.gmra.mxu3 %vm455_vm1, %v1230_v1 }
 0x6c7   :  { %1481 = vmatpush.bf16.xpose.msra.mxu3 %v1472_v63 }
 0x6cd   :  { %v1523_v2 = vpop.permute.xlu0 %1522  ;;  %v1287_v3 = vpop.permute.xlu1 %1286 }
 0x6ce   :  { %v1528_v62 = vsel %vm455_vm1, %v1523_v2, 0  ;;  %2017 = vmatmul.msk.bf16.vlgmr.msra.gmra.mxu1 %vm455_vm1, %v1287_v3 }
 0x6cf   :  { %1537 = vmatpush.bf16.xpose.msra.mxu1 %v1528_v62 }
 0x6d5   :  { %v1464_v12 = vpop.permute.xlu1 %1463  ;;  %v1576_v14 = vpop.permute.xlu0 %1575 }
 0x6d6   :  { %2019 = vmatmul.msk.bf16.vlgmr.msrb.gmra.mxu3 %vm455_vm1, %v1342_v0 }
 0x6d7   :  { %v1195_v9 = vpop.f32.mrf.mxu3  ;;  %1592 = vmatpush.bf16.xpose.msrb.mxu3 %v1583_v8 }
 0x6d8   :  { %v1199_v10 = vmul.f32 0.35355338, %v1195_v9 }
 0x6da   :  { %v1200_v5 = vsel %vm699_vm4, %v1199_v10, -inf }
 0x6db   :  { %1201 = vmax.xlane.f32.xlu2 %v1200_v5 }
 0x6dd   :  { %v1521_v13 = vpop.permute.xlu1 %1520 }
 0x6de   :  { %2021 = vmatmul.msk.bf16.vlgmr.msrb.gmra.mxu1 %vm455_vm1, %v1411_v58 }
 0x6df   :  { %v1197_v11 = vpop.f32.mrf.mxu3 }
 0x6e6   :  { %2023 = vmatmul.msk.bf16.vlgmr.msra.gmra.mxu3 %vm455_vm1, %v1464_v12 }
 0x6ee   :  { %2025 = vmatmul.msk.bf16.vlgmr.msra.gmra.mxu1 %vm455_vm1, %v1521_v13 }
 0x6f6   :  { %2027 = vmatmul.msk.bf16.vlgmr.msrb.gmra.mxu3 %vm455_vm1, %v1576_v14 }
 0x749   :  { %v1249_v15 = vpop.f32.mrf.mxu3 }
 0x74a   :  { %v1253_v16 = vmul.f32 0.35355338, %v1249_v15 }
 0x74b   :  { %v1305_v17 = vpop.f32.mrf.mxu1 }
 0x74c   :  { %v1309_v18 = vmul.f32 0.35355338, %v1305_v17  ;;  %v1254_v6 = vsel %vm699_vm4, %v1253_v16, -inf }
 0x74d   :  { %1255 = vmax.xlane.f32.xlu1 %v1254_v6  ;;  %v1172_v6 = vpop.f32.mrf.mxu2 }
 0x74e   :  { %v1202_v20 = vpop.xlane.xlu2 %1201  ;;  %v1310_v21 = vsel %vm699_vm4, %v1309_v18, -inf }
 0x74f   :  { %v1203_v22 = vsub.f32 %v1199_v10, %v1202_v20  ;;  %1311 = vmax.xlane.f32.xlu0 %v1310_v21 }
 0x751   :  { %v1204_v24 = vmul.f32 1.442695, %v1203_v22  ;;  %v1251_v25 = vpop.f32.mrf.mxu3 }
 0x753   :  { %2198 = vpow2.f32 %v1204_v24  ;;  %v1307_v26 = vpop.f32.mrf.mxu1  ;;  %v1173_v24 = vadd.f32 %v3137_v23, %v1172_v6 }
 0x755   :  { %v1174_v22 = vpop.f32.mrf.mxu2 }
 0x756   :  { %v1175_v25 = vadd.f32 %v3137_v23, %v1174_v22 }
 0x758   :  { %v1413_v28 = vpack.c.bf16 %v1175_v25, %v1173_v24 }
 0x759   :  { %v2199_v31 = vpop.eup %2198  ;;  %v1360_v32 = vpop.f32.mrf.mxu3 }
 0x75a   :  { %v1206_v33 = vsel %vm699_vm4, %v2199_v31, 0.0  ;;  %v1364_v36 = vmul.f32 0.35355338, %v1360_v32 }
 0x75b   :  { %1207 = vadd.xlane.f32.xlu2 %v1206_v33  ;;  %v1429_v34 = vpop.f32.mrf.mxu1 }
 0x75c   :  { %v1433_v35 = vmul.f32 0.35355338, %v1429_v34  ;;  %v1365_v41 = vsel %vm699_vm4, %v1364_v36, -inf }
 0x75e   :  { %v1434_v39 = vsel %vm699_vm4, %v1433_v35, -inf }
 0x75f   :  { %1435 = vmax.xlane.f32.xlu1 %v1434_v39 }
 0x761   :  { %v1362_v40 = vpop.f32.mrf.mxu3 }
 0x763   :  { %1366 = vmax.xlane.f32.xlu2 %v1365_v41  ;;  %v1431_v42 = vpop.f32.mrf.mxu1 }
 0x769   :  { %v1483_v43 = vpop.f32.mrf.mxu3 }
 0x76a   :  { %v1487_v44 = vmul.f32 0.35355338, %v1483_v43 }
 0x76b   :  { %v1539_v45 = vpop.f32.mrf.mxu1 }
 0x76c   :  { %v3144_v46 = vmul.f32 0.35355338, %v1539_v45  ;;  %v1488_v4 = vsel %vm699_vm4, %v1487_v44, -inf }
 0x76d   :  { %1489 = vmax.xlane.f32.xlu0 %v1488_v4 }
 0x76e   :  { %v1544_v47 = vsel %vm699_vm4, %v3144_v46, -inf }
 0x76f   :  { %1545 = vmax.xlane.f32.xlu1 %v1544_v47 }
 0x771   :  { %v1485_v48 = vpop.f32.mrf.mxu3 }
 0x773   :  { %v1541_v49 = vpop.f32.mrf.mxu1 }
 0x779   :  { %v1594_v51 = vpop.f32.mrf.mxu3 }
 0x77a   :  { %v3152_v53 = vmul.f32 0.35355338, %v1594_v51 }
 0x77b   :  { %1377 = vrot.lane.b32.xlu2 %v1179_v30, %s2690_s17 }
 0x77c   :  { %v1599_v54 = vsel %vm699_vm4, %v3152_v53, -inf }
 0x781   :  { %1322 = vrot.lane.b32.xlu0 %v1179_v30, %s2688_s7  ;;  %v1596_v52 = vpop.f32.mrf.mxu3 }
 0x788   :  { %1267 = vrot.lane.b32.xlu1 %v1179_v30, %s2689_s3 }
 0x7ab   :  { %1600 = vmax.xlane.f32.xlu0 %v1599_v54 }
 0x7c0   :  { %v1256_v55 = vpop.xlane.xlu1 %1255 }
 0x7c1   :  { %v1257_v56 = vsub.f32 %v1253_v16, %v1256_v55 }
 0x7c2   :  { %v1312_v57 = vpop.xlane.xlu0 %1311 }
 0x7c3   :  { %v1258_v58 = vmul.f32 1.442695, %v1257_v56  ;;  %v1313_v59 = vsub.f32 %v1309_v18, %v1312_v57 }
 0x7c5   :  { %2200 = vpow2.f32 %v1258_v58  ;;  %v1314_v60 = vmul.f32 1.442695, %v1313_v59 }
 0x7c7   :  { %2202 = vpow2.f32 %v1314_v60 }
 0x7cb   :  { %v3156_v61 = vpop.eup %2200 }
 0x7cc   :  { %v1260_v63 = vsel %vm699_vm4, %v3156_v61, 0.0 }
 0x7cd   :  { %v3160_v0 = vpop.eup %2202  ;;  %1261 = vadd.xlane.f32.xlu2 %v1260_v63 }
 0x7ce   :  { %v1208_v1 = vpop.xlane.xlu2 %1207  ;;  %v1316_v2 = vsel %vm699_vm4, %v3160_v0, 0.0 }
 0x7cf   :  { %2204 = vrcp.f32 %v1208_v1  ;;  %1317 = vadd.xlane.f32.xlu0 %v1316_v2 }
 0x7d2   :  { %v1436_v3 = vpop.xlane.xlu1 %1435 }
 0x7d3   :  { %v1437_v62 = vsub.f32 %v1433_v35, %v1436_v3 }
 0x7d5   :  { %v2205_v7 = vpop.eup %2204  ;;  %v1438_v8 = vmul.f32 1.442695, %v1437_v62 }
 0x7d6   :  { %v1210_v9 = vmul.f32 %v2205_v7, %v2199_v31  ;;  %v1367_v10 = vpop.xlane.xlu2 %1366 }
 0x7d7   :  { %2206 = vpow2.f32 %v1438_v8  ;;  %v1368_v5 = vsub.f32 %v1364_v36, %v1367_v10 }
 0x7d8   :  { %v1211_v11 = vpack.c.bf16 %v1210_v9, %v1210_v9 }
 0x7d9   :  { %v1369_v12 = vmul.f32 1.442695, %v1368_v5 }
 0x7da   :  { %2014 = vmatmul.msk.bf16.vlgmr.msra.gmra.mxu0 %vm699_vm4, %v1211_v11 }
 0x7db   :  { %2208 = vpow2.f32 %v1369_v12 }
 0x7dd   :  { %v2207_v13 = vpop.eup %2206 }
 0x7de   :  { %v1440_v14 = vsel %vm699_vm4, %v2207_v13, 0.0  ;;  %v1378_v30 = vpop.permute.xlu2 %1377 }
 0x7df   :  { %1441 = vadd.xlane.f32.xlu1 %v1440_v14 }
 0x7e0   :  { %v1490_v15 = vpop.xlane.xlu0 %1489 }
 0x7e1   :  { %v2209_v16 = vpop.eup %2208  ;;  %v1491_v17 = vsub.f32 %v1487_v44, %v1490_v15 }
 0x7e2   :  { %v1371_v18 = vsel %vm699_vm4, %v2209_v16, 0.0  ;;  %v1546_v26 = vpop.xlane.xlu1 %1545 }
 0x7e3   :  { %v1492_v19 = vmul.f32 1.442695, %v1491_v17  ;;  %1372 = vadd.xlane.f32.xlu2 %v1371_v18  ;;  %v1547_v31 = vsub.f32 %v3144_v46, %v1546_v26 }
 0x7e5   :  { %2210 = vpow2.f32 %v1492_v19  ;;  %v1548_v32 = vmul.f32 1.442695, %v1547_v31 }
 0x7e7   :  { %2212 = vpow2.f32 %v1548_v32 }
 0x7eb   :  { %v2211_v20 = vpop.eup %2210 }
 0x7ec   :  { %v1494_v21 = vsel %vm699_vm4, %v2211_v20, 0.0 }
 0x7ed   :  { %1495 = vadd.xlane.f32.xlu0 %v1494_v21  ;;  %v2213_v34 = vpop.eup %2212 }
 0x7ee   :  { %v1550_v36 = vsel %vm699_vm4, %v2213_v34, 0.0 }
 0x7f3   :  { %v1323_v27 = vpop.permute.xlu0 %1322 }
 0x7f4   :  { %1335 = vmatpush.bf16.msra.mxu2 %v1323_v27 }
 0x7f8   :  { %1456 = vmatpush.bf16.msrb.mxu2 %v1413_v28 }
 0x7fa   :  { %v1268_v29 = vpop.permute.xlu1 %1267 }
 0x7fb   :  { %1501 = vrot.lane.b32.xlu2 %v1413_v28, %s2689_s3  ;;  %1280 = vmatpush.bf16.msrb.mxu0 %v1268_v29  ;;  %v2079_v29 = vld [vmem:[#allocation17 + $0x8] sm:$0xff] }
 0x7fc   :  { %1670 = vmatpush.bf16.msrb.mxu1 %v2079_v29 }
 0x7ff   :  { %1390 = vmatpush.bf16.msra.mxu0 %v1378_v30  ;;  %v2078_v30 = vld [vmem:[#allocation17] sm:$0xff] }
 0x800   :  { %1671 = vmatpush.bf16.msrb.mxu1 %v2078_v30 }
 0x801   :  { %1556 = vrot.lane.b32.xlu0 %v1413_v28, %s2688_s7 }
 0x81e   :  { %v1601_v33 = vpop.xlane.xlu0 %1600 }
 0x81f   :  { %v1602_v23 = vsub.f32 %v3152_v53, %v1601_v33 }
 0x821   :  { %v1603_v35 = vmul.f32 1.442695, %v1602_v23 }
 0x823   :  { %2214 = vpow2.f32 %v1603_v35 }
 0x824   :  { %1551 = vadd.xlane.f32.xlu2 %v1550_v36 }
 0x829   :  { %v2215_v39 = vpop.eup %2214 }
 0x82a   :  { %v1605_v40 = vsel %vm699_vm4, %v2215_v39, 0.0 }
 0x82b   :  { %1606 = vadd.xlane.f32.xlu1 %v1605_v40 }
 0x840   :  { %v1262_v41 = vpop.xlane.xlu2 %1261 }
 0x841   :  { %2216 = vrcp.f32 %v1262_v41 }
 0x842   :  { %v1318_v42 = vpop.xlane.xlu0 %1317 }
 0x843   :  { %2218 = vrcp.f32 %v1318_v42 }
 0x844   :  { %1611 = vrot.lane.b32.xlu1 %v1413_v28, %s2690_s17 }
 0x847   :  { %v2217_v43 = vpop.eup %2216 }
 0x848   :  { %v1264_v44 = vmul.f32 %v2217_v43, %v3156_v61 }
 0x849   :  { %v2219_v45 = vpop.eup %2218 }
 0x84a   :  { %v1265_v46 = vpack.c.bf16 %v1264_v44, %v1264_v44  ;;  %v1320_v4 = vmul.f32 %v2219_v45, %v3160_v0 }
 0x84c   :  { %v1321_v47 = vpack.c.bf16 %v1320_v4, %v1320_v4  ;;  %2016 = vmatmul.msk.bf16.vlgmr.msrb.gmra.mxu0 %vm699_vm4, %v1265_v46 }
 0x84e   :  { %2018 = vmatmul.msk.bf16.vlgmr.msra.gmra.mxu2 %vm699_vm4, %v1321_v47  ;;  %v2153_v47 = vld [vmem:[#allocation19] ss:$0 sm:$0xff] }
 0x852   :  { %v1442_v48 = vpop.xlane.xlu1 %1441 }
 0x853   :  { %2220 = vrcp.f32 %v1442_v48 }
 0x856   :  { %v1373_v49 = vpop.xlane.xlu2 %1372 }
 0x857   :  { %2222 = vrcp.f32 %v1373_v49  ;;  %v3181_v51 = vpop.f32.mrf.mxu0 }
 0x859   :  { %v2221_v52 = vpop.eup %2220 }
 0x85a   :  { %v1444_v53 = vmul.f32 %v2221_v52, %v2207_v13 }
 0x85c   :  { %v1445_v54 = vpack.c.bf16 %v1444_v53, %v1444_v53 }
 0x85d   :  { %v2223_v55 = vpop.eup %2222 }
 0x85e   :  { %v1375_v56 = vmul.f32 %v2223_v55, %v2209_v16  ;;  %2022 = vmatmul.msk.bf16.vlgmr.msrb.gmra.mxu2 %vm699_vm4, %v1445_v54  ;;  %v1502_v57 = vpop.permute.xlu2 %1501 }
 0x85f   :  { %v1226_v58 = vpop.f32.mrf.mxu0  ;;  %1514 = vmatpush.bf16.msrb.mxu0 %v1502_v57 }
 0x860   :  { %v1376_v59 = vpack.c.bf16 %v1375_v56, %v1375_v56  ;;  %v1496_v60 = vpop.xlane.xlu0 %1495 }
 0x861   :  { %2224 = vrcp.f32 %v1496_v60 }
 0x862   :  { %2020 = vmatmul.msk.bf16.vlgmr.msra.gmra.mxu0 %vm699_vm4, %v1376_v59 }
 0x867   :  { %v2225_v61 = vpop.eup %2224 }
 0x868   :  { %v1498_v63 = vmul.f32 %v2225_v61, %v2211_v20 }
 0x86a   :  { %v1499_v0 = vpack.c.bf16 %v1498_v63, %v1498_v63 }
 0x872   :  { %2024 = vmatmul.msk.bf16.vlgmr.msrb.gmra.mxu0 %vm699_vm4, %v1499_v0 }
 0x873   :  { %v1557_v1 = vpop.permute.xlu0 %1556 }
 0x874   :  { %1569 = vmatpush.bf16.msra.mxu2 %v1557_v1 }
 0x897   :  { %v1552_v2 = vpop.xlane.xlu2 %1551 }
 0x898   :  { %2226 = vrcp.f32 %v1552_v2 }
 0x89e   :  { %v2227_v3 = vpop.eup %2226  ;;  %v1607_v8 = vpop.xlane.xlu1 %1606 }
 0x89f   :  { %v1554_v62 = vmul.f32 %v2227_v3, %v2213_v34  ;;  %2228 = vrcp.f32 %v1607_v8  ;;  %v2080_v8 = vld [vmem:[#allocation23] sm:$0xff] }
 0x8a1   :  { %v1555_v7 = vpack.c.bf16 %v1554_v62, %v1554_v62 }
 0x8a3   :  { %2026 = vmatmul.msk.bf16.vlgmr.msra.gmra.mxu2 %vm699_vm4, %v1555_v7 }
 0x8a5   :  { %v2229_v9 = vpop.eup %2228 }
 0x8a6   :  { %v1609_v10 = vmul.f32 %v2229_v9, %v2215_v39 }
 0x8a8   :  { %v1610_v11 = vpack.c.bf16 %v1609_v10, %v1609_v10 }
 0x8b6   :  { %v1612_v5 = vpop.permute.xlu1 %1611 }
 0x8b7   :  { %1624 = vmatpush.bf16.msra.mxu0 %v1612_v5 }
 0x8ba   :  { %2028 = vmatmul.msk.bf16.vlgmr.msra.gmra.mxu0 %vm699_vm4, %v1610_v11 }
 0x8c9   :  { %v1282_v12 = vpop.f32.mrf.mxu0 }
 0x8d1   :  { %v1284_v13 = vpop.f32.mrf.mxu0  ;;  %v1337_v14 = vpop.f32.mrf.mxu2 }
 0x8d9   :  { %v1339_v15 = vpop.f32.mrf.mxu2 }
 0x8df   :  { %v1392_v16 = vpop.f32.mrf.mxu0 }
 0x8e1   :  { %v1458_v17 = vpop.f32.mrf.mxu2 }
 0x8e7   :  { %v1394_v18 = vpop.f32.mrf.mxu0 }
 0x8e9   :  { %v1460_v6 = vpop.f32.mrf.mxu2 }
 0x8ef   :  { %v1516_v19 = vpop.f32.mrf.mxu0 }
 0x8f0   :  { %v2129_v20 = vpack.i.bf16 %v1516_v19, %v1282_v12 }
 0x8f2   :  { %2130 = vrot.lane.b32.xlu2 %v2129_v20, %s2692_s30 }
 0x8f7   :  { %v1518_v21 = vpop.f32.mrf.mxu0 }
 0x926   :  { %v1571_v22 = vpop.f32.mrf.mxu2 }
 0x927   :  { %v2134_v24 = vpack.i.bf16 %v1571_v22, %v1337_v14  ;;  %v2154_v22 = vld [vmem:[#allocation20] ss:$0 sm:$0xff] }
 0x929   :  { %2135 = vrot.lane.b32.xlu0 %v2134_v24, %s2693_s20 }
 0x92e   :  { %v1573_v25 = vpop.f32.mrf.mxu2 }
 0x937   :  { %v1626_v26 = vpop.f32.mrf.mxu0 }
 0x938   :  { %v2139_v27 = vpack.i.bf16 %v1626_v26, %v1392_v16 }
 0x93a   :  { %2140 = vrot.lane.b32.xlu0 %v2139_v27, %s2694_s19  ;;  %v2155_v27 = vld [vmem:[#allocation22] ss:$0 sm:$0xff] }
 0x93f   :  { %v1628_v28 = vpop.f32.mrf.mxu0 }
 0x94c   :  { %v2131_v32 = vpop.permute.xlu2 %2130 }
 0x94d   :  { %v2133_v33 = vunpack.i.h.bf16 %v2131_v32  ;;  %v2132_v23 = vunpack.i.l.bf16 %v2131_v32 }
 0x94f   :  { %v1642_v39 = vsel %vm455_vm1, %v1458_v17, %v2133_v33  ;;  %v1408_v40 = vsel %vm455_vm1, %v3181_v51, %v2132_v23  ;;  %v2085_v23 = vld [vmem:[%s3266_s24 + $0x18] sm:$0xff] }
 0x950   :  { %1835 = vmatpush.bf16.msra.mxu3 %v2085_v23 }
 0x99b   :  { %v2136_v31 = vpop.permute.xlu0 %2135 }
 0x99c   :  { %v2138_v34 = vunpack.i.h.bf16 %v2136_v31  ;;  %v2137_v35 = vunpack.i.l.bf16 %v2136_v31 }
 0x99e   :  { %v1643_v43 = vsel %vm699_vm4, %v1642_v39, %v2138_v34  ;;  %v1409_v44 = vsel %vm699_vm4, %v1408_v40, %v2137_v35  ;;  %v2084_v34 = vld [vmem:[%s3266_s24 + $0x10] sm:$0xff]  ;;  %v2083_v35 = vld [vmem:[%s3266_s24 + $0x8] sm:$0xff]  ;;  %v2082_v40 = vld [vmem:[%s3266_s24] sm:$0xff]  ;;  %vm1827_vm4 = vcmask 523264  }
 0x99f   :  { %1836 = vmatpush.bf16.msra.mxu3 %v2084_v34 }
 0x9a3   :  { %1837 = vmatpush.bf16.msra.mxu3 %v2083_v35 }
 0x9a7   :  { %1838 = vmatpush.bf16.msra.mxu3 %v2082_v40 }
 0x9ac   :  { %v2141_v36 = vpop.permute.xlu0 %2140 }
 0x9ad   :  { %v2143_v41 = vunpack.i.h.bf16 %v2141_v36  ;;  %v2142_v42 = vunpack.i.l.bf16 %v2141_v36  ;;  %v2156_v36 = vld [vmem:[#allocation25] ss:$0 sm:$0xff] }
 0x9af   :  { %v1410_v45 = vsel %vm701_vm5, %v1409_v44, %v2142_v42  ;;  %v1644_v46 = vsel %vm701_vm5, %v1643_v43, %v2143_v41 }
 0x9b0   :  { %v1645_v4 = vpack.c.bf16 %v1644_v46, %v1410_v45 }
 0x9b2   :  { %2037 = vmatmul.msk.bf16.vlgmr.msrb.gmra.mxu1 %vm370_vm0, %v1645_v4 }
 0xa2f   :  { %v1673_v48 = vpop.f32.mrf.mxu1 }
 0xa30   :  { %v1674_v49 = vadd.f32 %v2153_v47, %v1673_v48 }
 0xa32   :  { %v1678_v52 = vadd.f32 %v1674_v49, %v3096_v37 }
 0xa34   :  { %v1680_v51 = vsel %vm370_vm0, %v1678_v52, 0.0 }
 0xa35   :  { %1681 = vadd.xlane.f32.xlu1 %v1680_v51 }
 0xa37   :  { %v1675_v53 = vpop.f32.mrf.mxu1 }
 0xa38   :  { %v1676_v54 = vadd.f32 %v2153_v47, %v1675_v53 }
 0xa3a   :  { %v1679_v55 = vadd.f32 %v1676_v54, %v3098_v38  ;;  %v2081_v38 = vld [vmem:[#allocation23 + $0x8] sm:$0xff] }
 0xa3b   :  { %1764 = vmatpush.bf16.msrb.mxu2 %v2081_v38 }
 0xa3c   :  { %v1683_v56 = vsel %vm370_vm0, %v1679_v55, 0.0 }
 0xa3d   :  { %1684 = vadd.xlane.f32.xlu2 %v1683_v56 }
 0xa3f   :  { %1765 = vmatpush.bf16.msrb.mxu2 %v2080_v8 }
 0xaa8   :  { %v1682_v57 = vpop.xlane.xlu1 %1681 }
 0xaa9   :  { %v1686_v58 = vmul.f32 %v1682_v57, %v3068_v50 }
 0xaab   :  { %v1688_v59 = vsub.f32 %v1678_v52, %v1686_v58 }
 0xaad   :  { %v1690_v60 = vmul.f32 %v1688_v59, %v1688_v59 }
 0xaaf   :  { %v1692_v61 = vsel %vm370_vm0, %v1690_v60, 0.0 }
 0xab0   :  { %v1685_v63 = vpop.xlane.xlu2 %1684  ;;  %1693 = vadd.xlane.f32.xlu0 %v1692_v61 }
 0xab1   :  { %v1687_v37 = vmul.f32 %v1685_v63, %v3068_v50 }
 0xab3   :  { %v1689_v0 = vsub.f32 %v1679_v55, %v1687_v37  ;;  %v2157_v37 = vld [vmem:[%s3267_s25] ss:$0 sm:$0xff] }
 0xab5   :  { %v1691_v1 = vmul.f32 %v1689_v0, %v1689_v0 }
 0xab7   :  { %v1695_v2 = vsel %vm370_vm0, %v1691_v1, 0.0 }
 0xab8   :  { %1696 = vadd.xlane.f32.xlu1 %v1695_v2 }
 0xb23   :  { %v1694_v3 = vpop.xlane.xlu0 %1693 }
 0xb24   :  { %v1698_v62 = vmul.f32 %v1694_v3, %v3068_v50 }
 0xb26   :  { %v1700_v7 = vadd.f32 1e-05, %v1698_v62 }
 0xb28   :  { %2230 = vrsqrt.f32 %v1700_v7  ;;  %vm1708_vm14 = vweird.f32 %v1700_v7 }
 0xb2b   :  { %v1697_v9 = vpop.xlane.xlu1 %1696 }
 0xb2c   :  { %v1699_v10 = vmul.f32 %v1697_v9, %v3068_v50 }
 0xb2e   :  { %v2231_v5 = vpop.eup %2230  ;;  %v1701_v11 = vadd.f32 1e-05, %v1699_v10 }
 0xb2f   :  { %v1703_v12 = vmul.f32 %v2231_v5, %v1700_v7  ;;  %vm1709_vm13 = vweird.f32 %v2231_v5 }
 0xb30   :  { %2232 = vrsqrt.f32 %v1701_v11  ;;  %vm1710_vm15 = vmor %vm1708_vm14, %vm1709_vm13  ;;  %vm1718_vm2 = vweird.f32 %v1701_v11 }
 0xb31   :  { %v1704_v13 = vmul.f32 %v2231_v5, %v1703_v12 }
 0xb33   :  { %v1705_v14 = vmul.f32 0.5, %v1704_v13 }
 0xb35   :  { %v1706_v15 = vsub.f32 1.5, %v1705_v14 }
 0xb36   :  { %v2233_v16 = vpop.eup %2232 }
 0xb37   :  { %v1707_v17 = vmul.f32 %v2231_v5, %v1706_v15  ;;  %v1713_v18 = vmul.f32 %v2233_v16, %v1701_v11  ;;  %vm1719_vm1 = vweird.f32 %v2233_v16 }
 0xb38   :  { %vm1720_vm3 = vmor %vm1718_vm2, %vm1719_vm1 }
 0xb39   :  { %v1714_v6 = vmul.f32 %v2233_v16, %v1713_v18  ;;  %v1711_v19 = vsel %vm1710_vm15, %v2231_v5, %v1707_v17 }
 0xb3a   :  { %v1722_v24 = vmul.f32 %v1711_v19, %v1688_v59 }
 0xb3b   :  { %v1715_v20 = vmul.f32 0.5, %v1714_v6 }
 0xb3c   :  { %v1727_v28 = vmul.f32 %v2154_v22, %v1722_v24 }
 0xb3d   :  { %v1716_v21 = vsub.f32 1.5, %v1715_v20 }
 0xb3e   :  { %v1732_v31 = vadd.f32 %v2155_v27, %v1727_v28 }
 0xb3f   :  { %v1717_v25 = vmul.f32 %v2233_v16, %v1716_v21 }
 0xb41   :  { %v1721_v26 = vsel %vm1720_vm3, %v2233_v16, %v1717_v25 }
 0xb42   :  { %v1723_v29 = vmul.f32 %v1721_v26, %v1689_v0 }
 0xb44   :  { %v1728_v30 = vmul.f32 %v2154_v22, %v1723_v29 }
 0xb46   :  { %v1733_v32 = vadd.f32 %v2155_v27, %v1728_v30 }
 0xb48   :  { %v1734_v33 = vpack.c.bf16 %v1733_v32, %v1732_v31 }
 0xb4a   :  { %2046 = vmatmul.msk.bf16.vlgmr.msrb.gmra.mxu2 %vm370_vm0, %v1734_v33 }
 0xbcd   :  { %v1767_v39 = vpop.f32.mrf.mxu2 }
 0xbce   :  { %v1768_v41 = vadd.f32 %v2156_v36, %v1767_v39 }
 0xbd0   :  { %v1772_v42 = vmul.f32 %v1768_v41, %v1768_v41 }
 0xbd2   :  { %v1774_v43 = vmul.f32 %v1772_v42, %v1768_v41 }
 0xbd4   :  { %v1776_v44 = vmul.f32 0.044715, %v1774_v43 }
 0xbd5   :  { %v1769_v45 = vpop.f32.mrf.mxu2 }
 0xbd6   :  { %v1778_v46 = vadd.f32 %v1776_v44, %v1768_v41  ;;  %v1770_v4 = vadd.f32 %v2156_v36, %v1769_v45 }
 0xbd8   :  { %v1780_v47 = vmul.f32 0.7978846, %v1778_v46  ;;  %v1773_v48 = vmul.f32 %v1770_v4, %v1770_v4 }
 0xbda   :  { %v1775_v49 = vmul.f32 %v1773_v48, %v1770_v4  ;;  %2234 = vtanh.f32 %v1780_v47 }
 0xbdc   :  { %v1777_v52 = vmul.f32 0.044715, %v1775_v49 }
 0xbde   :  { %v1779_v51 = vadd.f32 %v1777_v52, %v1770_v4 }
 0xbe0   :  { %v1781_v53 = vmul.f32 0.7978846, %v1779_v51  ;;  %v2235_v54 = vpop.eup %2234 }
 0xbe1   :  { %v1784_v55 = vadd.f32 1.0, %v2235_v54 }
 0xbe2   :  { %2236 = vtanh.f32 %v1781_v53 }
 0xbe3   :  { %v1786_v57 = vmul.f32 0.5, %v1784_v55 }
 0xbe5   :  { %v1788_v60 = vmul.f32 %v1786_v57, %v1768_v41 }
 0xbe8   :  { %v2237_v56 = vpop.eup %2236 }
 0xbe9   :  { %v1785_v58 = vadd.f32 1.0, %v2237_v56 }
 0xbeb   :  { %v1787_v59 = vmul.f32 0.5, %v1785_v58 }
 0xbed   :  { %v1789_v61 = vmul.f32 %v1787_v59, %v1770_v4 }
 0xbef   :  { %v1790_v63 = vpack.c.bf16 %v1789_v61, %v1788_v60 }
 0xbf1   :  { %2063 = vmatmul.msk.bf16.vlgmr.msra.gmra.mxu3 %vm1827_vm4, %v1790_v63 }
 0xc74   :  { %v1840_v0 = vpop.f32.mrf.mxu3 }
 0xc75   :  { %v1841_v1 = vadd.f32 %v2157_v37, %v1840_v0 }
 0xc77   :  { %v1845_v2 = vadd.f32 %v1841_v1, %v1732_v31 }
 0xc79   :  { %v1849_v38 = vsel %vm370_vm0, %v1845_v2, 0.0 }
 0xc7a   :  { %1850 = vadd.xlane.f32.xlu2 %v1849_v38 }
 0xc7c   :  { %v1842_v3 = vpop.f32.mrf.mxu3 }
 0xc7d   :  { %v1843_v62 = vadd.f32 %v2157_v37, %v1842_v3 }
 0xc7f   :  { %v1846_v7 = vadd.f32 %v1843_v62, %v1733_v32  ;;  %v2158_v32 = vld [vmem:[#allocation26] ss:$0 sm:$0xff] }
 0xc81   :  { %v1852_v8 = vsel %vm370_vm0, %v1846_v7, 0.0 }
 0xc82   :  { %1853 = vadd.xlane.f32.xlu0 %v1852_v8 }
 0xced   :  { %v1851_v9 = vpop.xlane.xlu2 %1850 }
 0xcee   :  { %v1855_v10 = vmul.f32 %v1851_v9, %v3068_v50 }
 0xcf0   :  { %v1857_v5 = vsub.f32 %v1845_v2, %v1855_v10 }
 0xcf2   :  { %v1859_v11 = vmul.f32 %v1857_v5, %v1857_v5 }
 0xcf4   :  { %v1861_v12 = vsel %vm370_vm0, %v1859_v11, 0.0 }
 0xcf5   :  { %v1854_v13 = vpop.xlane.xlu0 %1853  ;;  %1862 = vadd.xlane.f32.xlu1 %v1861_v12 }
 0xcf6   :  { %v1856_v14 = vmul.f32 %v1854_v13, %v3068_v50 }
 0xcf8   :  { %v1858_v15 = vsub.f32 %v1846_v7, %v1856_v14 }
 0xcfa   :  { %v1860_v16 = vmul.f32 %v1858_v15, %v1858_v15 }
 0xcfc   :  { %v1864_v17 = vsel %vm370_vm0, %v1860_v16, 0.0 }
 0xcfd   :  { %1865 = vadd.xlane.f32.xlu2 %v1864_v17 }
 0xd68   :  { %v1863_v18 = vpop.xlane.xlu1 %1862 }
 0xd69   :  { %v1867_v6 = vmul.f32 %v1863_v18, %v3068_v50 }
 0xd6b   :  { %v1869_v19 = vadd.f32 1e-05, %v1867_v6 }
 0xd6d   :  { %2238 = vrsqrt.f32 %v1869_v19  ;;  %vm1877_vm6 = vweird.f32 %v1869_v19 }
 0xd70   :  { %v1866_v20 = vpop.xlane.xlu2 %1865 }
 0xd71   :  { %v1868_v21 = vmul.f32 %v1866_v20, %v3068_v50  ;;  %v2159_v50 = vld [vmem:[%s3269_s27] ss:$0 sm:$0xff]  ;;  %s2697_s27 = smov 128  }
 0xd73   :  { %v2239_v22 = vpop.eup %2238  ;;  %v1870_v24 = vadd.f32 1e-05, %v1868_v21 }
 0xd74   :  { %v1872_v25 = vmul.f32 %v2239_v22, %v1869_v19  ;;  %vm1878_vm5 = vweird.f32 %v2239_v22 }
 0xd75   :  { %2240 = vrsqrt.f32 %v1870_v24  ;;  %vm1879_vm7 = vmor %vm1877_vm6, %vm1878_vm5  ;;  %vm1887_vm9 = vweird.f32 %v1870_v24 }
 0xd76   :  { %v1873_v26 = vmul.f32 %v2239_v22, %v1872_v25 }
 0xd78   :  { %v1874_v27 = vmul.f32 0.5, %v1873_v26 }
 0xd7a   :  { %v1875_v28 = vsub.f32 1.5, %v1874_v27 }
 0xd7b   :  { %v2241_v29 = vpop.eup %2240 }
 0xd7c   :  { %v1876_v30 = vmul.f32 %v2239_v22, %v1875_v28  ;;  %v1882_v31 = vmul.f32 %v2241_v29, %v1870_v24  ;;  %vm1888_vm8 = vweird.f32 %v2241_v29 }
 0xd7d   :  { %vm1889_vm10 = vmor %vm1887_vm9, %vm1888_vm8 }
 0xd7e   :  { %v1880_v33 = vsel %vm1879_vm7, %v2239_v22, %v1876_v30  ;;  %v1883_v23 = vmul.f32 %v2241_v29, %v1882_v31 }
 0xd7f   :  { %v1891_v34 = vmul.f32 %v1880_v33, %v1857_v5 }
 0xd80   :  { %v1884_v35 = vmul.f32 0.5, %v1883_v23 }
 0xd81   :  { %v1896_v36 = vmul.f32 %v2158_v32, %v1891_v34 }
 0xd82   :  { %v1885_v39 = vsub.f32 1.5, %v1884_v35 }
 0xd83   :  { %v1901_v40 = vadd.f32 %v2159_v50, %v1896_v36 }
 0xd84   :  { %v1886_v41 = vmul.f32 %v2241_v29, %v1885_v39 }
 0xd85   :  { %1903 = vst.msk [vmem:[#allocation28] sm:$0xff] %vm370_vm0, %v1901_v40 }
 0xd86   :  { %v1890_v42 = vsel %vm1889_vm10, %v2241_v29, %v1886_v41 }
 0xd87   :  { %v1892_v43 = vmul.f32 %v1890_v42, %v1858_v15 }
 0xd89   :  { %v1897_v44 = vmul.f32 %v2158_v32, %v1892_v43 }
 0xd8b   :  { %v1902_v45 = vadd.f32 %v2159_v50, %v1897_v44 }
 0xd8d   :  { %1904 = vst.msk [vmem:[#allocation28 + $0x8] sm:$0xff] %vm370_vm0, %v1902_v45 }
 0xd8e   :  { %1917 = dma.vmem_to_hbm [thread:$0]  %s1910_s16, 256, %s1912_s29, [#allocation4], %s2697_s27, %s2697_s27, %s2692_s30  }
 0xd8f   :  { %2668 = dma.done.wait [#allocation4], 256  }
 0xd90   :  { %2669 = vsyncadd [#allocation4], 4294967040 }
 0xd91   :  { %1922 = vsyncpa [#allocation3], 1 }
 0xd92   :  { %1923 = vsyncpa [#allocation6], 1 }
 0xd93   :  { %1924 = vsyncpa [#allocation9], 1 }
 0xd94   :  { %1925 = vsyncpa [#allocation12], 1 }
 0xd95   :  { %1926 = vsyncpa [#allocation15], 1 }
 0xd96   :  { %1927 = vsyncpa [#allocation18], 1 }
 0xd97   :  { %1928 = vsyncpa [#allocation21], 1 }
 0xd98   :  { %1929 = vsyncpa [#allocation24], 1 }
 0xd99   :  { %1930 = vsyncpa [#allocation27], 1 }
 0xd9a   :  { %1931 = vsyncpa [#allocation4], 1 }

</bundles_post_ra>
